<compile_context>
chip_gen: v6e
topology: v6e:2x2x1
jax: 0.10.0
libtpu: 0.0.40
codegen_flags: <defaults>
</compile_context>

<pallas_src>
import functools

import jax
import jax.numpy as jnp
from jax.experimental import pallas as pl
from jax.experimental.pallas import tpu as pltpu

NUM_CLASSES = 10
OUT_PAD = 128            # lane-dense padded class dim
HIDDEN = 256
IN_FEATURES = 28 * 28    # 784
IN_PAD = 896             # 7 * 128, aligned K for layer 1


def mlp_kernel(x_ref, w1_ref, b1_ref, w2_ref, b2_ref, w3_ref, b3_ref, o_ref):
    # Layer 1: Linear(896 -> 256) + ReLU   (bf16 operands, f32 accumulate)
    h1 = jnp.dot(x_ref[...], w1_ref[...], preferred_element_type=jnp.float32)
    h1 = jnp.maximum(h1 + b1_ref[...], 0.0)
    # Layer 2: Linear(256 -> 256) + ReLU
    h2 = jnp.dot(h1.astype(jnp.bfloat16), w2_ref[...],
                 preferred_element_type=jnp.float32)
    h2 = jnp.maximum(h2 + b2_ref[...], 0.0)
    # Layer 3: Linear(256 -> 128 padded), no activation
    out = jnp.dot(h2.astype(jnp.bfloat16), w3_ref[...],
                  preferred_element_type=jnp.float32)
    o_ref[...] = (out + b3_ref[...]).astype(o_ref.dtype)


def _prepare_params(params):
    """Pad + cast 'PyTorch-shaped' params for the kernel.

    w*: [in, out] (transposed vs nn.Linear weight), b*: [1, out].
    Returns bf16 weights (w1 K-padded to 896, w3 N-padded to 128) and f32
    biases (b3 padded to 128)."""
    w1 = jnp.pad(params["w1"], ((0, IN_PAD - IN_FEATURES), (0, 0)))
    w3 = jnp.pad(params["w3"], ((0, 0), (0, OUT_PAD - NUM_CLASSES)))
    b3 = jnp.pad(params["b3"], ((0, 0), (0, OUT_PAD - NUM_CLASSES)))
    return (
        w1.astype(jnp.bfloat16),
        params["b1"].astype(jnp.float32),
        params["w2"].astype(jnp.bfloat16),
        params["b2"].astype(jnp.float32),
        w3.astype(jnp.bfloat16),
        b3.astype(jnp.float32),
    )


@functools.partial(jax.jit, static_argnames=("bm",))
def mnist_net_forward(x, params, *, bm=256):
    """x: [B, 784] float32. params: dict of w1,b1,w2,b2,w3,b3 (torch layout,
    transposed weights). Returns [B, 10] float32 logits."""
    B, F = x.shape
    assert F == IN_FEATURES
    w1, b1, w2, b2, w3, b3 = _prepare_params(params)

    # Pad batch to a tile multiple and features to the aligned K; cast to bf16.
    n_tiles = pl.cdiv(B, bm)
    B_pad = n_tiles * bm
    x_pad = jnp.pad(x, ((0, B_pad - B), (0, IN_PAD - IN_FEATURES)))
    x_pad = x_pad.astype(jnp.bfloat16)

    flops = 2 * B_pad * (IN_PAD * HIDDEN + HIDDEN * HIDDEN + HIDDEN * OUT_PAD)
    bytes_accessed = (
        x_pad.size * 2
        + (w1.size + w2.size + w3.size) * 2
        + (b1.size + b2.size + b3.size) * 4
        + B_pad * OUT_PAD * 4
    )

    out = pl.pallas_call(
        mlp_kernel,
        out_shape=jax.ShapeDtypeStruct((B_pad, OUT_PAD), jnp.float32),
        grid_spec=pltpu.PrefetchScalarGridSpec(
            num_scalar_prefetch=0,
            grid=(n_tiles,),
            in_specs=[
                pl.BlockSpec((bm, IN_PAD), lambda i: (i, 0)),        # x tile
                pl.BlockSpec((IN_PAD, HIDDEN), lambda i: (0, 0)),    # w1
                pl.BlockSpec((1, HIDDEN), lambda i: (0, 0)),         # b1
                pl.BlockSpec((HIDDEN, HIDDEN), lambda i: (0, 0)),    # w2
                pl.BlockSpec((1, HIDDEN), lambda i: (0, 0)),         # b2
                pl.BlockSpec((HIDDEN, OUT_PAD), lambda i: (0, 0)),   # w3 (padded)
                pl.BlockSpec((1, OUT_PAD), lambda i: (0, 0)),        # b3 (padded)
            ],
            out_specs=pl.BlockSpec((bm, OUT_PAD), lambda i: (i, 0)),
        ),
        compiler_params=pltpu.CompilerParams(
            dimension_semantics=("parallel",),
        ),
        cost_estimate=pl.CostEstimate(
            flops=flops, transcendentals=0, bytes_accessed=bytes_accessed
        ),
    )(x_pad, w1, b1, w2, b2, w3, b3)

    # Strip batch padding and the lane padding of the class dimension.
    return out[:B, :NUM_CLASSES]


def init_params(key):
    """Deterministic init mimicking nn.Linear default (uniform +/- 1/sqrt(fan_in))."""
    ks = jax.random.split(key, 6)

    def linear(kw, kb, fan_in, fan_out):
        bound = 1.0 / jnp.sqrt(fan_in)
        w = jax.random.uniform(kw, (fan_in, fan_out), jnp.float32, -bound, bound)
        b = jax.random.uniform(kb, (1, fan_out), jnp.float32, -bound, bound)
        return w, b

    w1, b1 = linear(ks[0], ks[1], IN_FEATURES, HIDDEN)
    w2, b2 = linear(ks[2], ks[3], HIDDEN, HIDDEN)
    w3, b3 = linear(ks[4], ks[5], HIDDEN, NUM_CLASSES)
    return {"w1": w1, "b1": b1, "w2": w2, "b2": b2, "w3": w3, "b3": b3}


def reference_forward(x, p):
    """Reference with the same bf16-operand / f32-accumulate arithmetic."""
    xb = x.astype(jnp.bfloat16)
    h1 = jnp.dot(xb, p["w1"].astype(jnp.bfloat16),
                 preferred_element_type=jnp.float32) + p["b1"]
    h1 = jnp.maximum(h1, 0.0)
    h2 = jnp.dot(h1.astype(jnp.bfloat16), p["w2"].astype(jnp.bfloat16),
                 preferred_element_type=jnp.float32) + p["b2"]
    h2 = jnp.maximum(h2, 0.0)
    return jnp.dot(h2.astype(jnp.bfloat16), p["w3"].astype(jnp.bfloat16),
                   preferred_element_type=jnp.float32) + p["b3"]


if __name__ == "__main__":
    key = jax.random.PRNGKey(0)
    k_params, k_x = jax.random.split(key)
    params = init_params(k_params)

    B = 8  # small test batch; wrapper pads to the 256-row tile internally
    x = jax.random.normal(k_x, (B, IN_FEATURES), dtype=jnp.float32)

    out = mnist_net_forward(x, params)
    out = jax.block_until_ready(out)

    ref = reference_forward(x, params)
    assert out.shape == (B, NUM_CLASSES)
    assert jnp.allclose(out, ref, atol=2e-2, rtol=2e-2), "mismatch vs reference"

    print("KERNEL_OK")
</pallas_src>

<mosaic_0001>
module attributes {stable_mosaic.version = 11 : i64} {
  func.func @mlp_kernel(%arg0: i32, %arg1: memref<256x896xbf16, #tpu.memory_space<vmem>>, %arg2: memref<896x256xbf16, #tpu.memory_space<vmem>>, %arg3: memref<1x256xf32, #tpu.memory_space<vmem>>, %arg4: memref<256x256xbf16, #tpu.memory_space<vmem>>, %arg5: memref<1x256xf32, #tpu.memory_space<vmem>>, %arg6: memref<256x128xbf16, #tpu.memory_space<vmem>>, %arg7: memref<1x128xf32, #tpu.memory_space<vmem>>, %arg8: memref<256x128xf32, #tpu.memory_space<vmem>>) attributes {dimension_semantics = [#tpu.dimension_semantics<parallel>], iteration_bounds = array<i64: 1>, scalar_prefetch = 0 : i64, scratch_operands = 0 : i64, tpu.core_type = #tpu.core_type<tc>, window_params = [{transform_indices = @transform_0, window_bounds = array<i64: 256, 896>}, {pipeline_mode = #tpu.pipeline_mode<synchronous>, transform_indices = @transform_1, window_bounds = array<i64: 896, 256>}, {pipeline_mode = #tpu.pipeline_mode<synchronous>, transform_indices = @transform_2, window_bounds = array<i64: 1, 256>}, {pipeline_mode = #tpu.pipeline_mode<synchronous>, transform_indices = @transform_3, window_bounds = array<i64: 256, 256>}, {pipeline_mode = #tpu.pipeline_mode<synchronous>, transform_indices = @transform_4, window_bounds = array<i64: 1, 256>}, {pipeline_mode = #tpu.pipeline_mode<synchronous>, transform_indices = @transform_5, window_bounds = array<i64: 256, 128>}, {pipeline_mode = #tpu.pipeline_mode<synchronous>, transform_indices = @transform_6, window_bounds = array<i64: 1, 128>}, {transform_indices = @transform_7, window_bounds = array<i64: 256, 128>}]} {
    %c0 = arith.constant 0 : index
    %c0_0 = arith.constant 0 : index
    %0 = vector.load %arg1[%c0, %c0_0] : memref<256x896xbf16, #tpu.memory_space<vmem>>, vector<256x896xbf16>
    %c0_1 = arith.constant 0 : index
    %c0_2 = arith.constant 0 : index
    %1 = vector.load %arg2[%c0_1, %c0_2] : memref<896x256xbf16, #tpu.memory_space<vmem>>, vector<896x256xbf16>
    %cst = arith.constant dense<0.000000e+00> : vector<256x256xf32>
    %2 = tpu.matmul %0, %1, %cst {dimension_numbers = #tpu.dot_dimension_numbers<[1], [0], [0], [1], [0, 0, 1, 1], [], []>} : vector<256x896xbf16>, vector<896x256xbf16>, vector<256x256xf32> -> vector<256x256xf32>
    %c0_3 = arith.constant 0 : index
    %c0_4 = arith.constant 0 : index
    %3 = vector.load %arg3[%c0_3, %c0_4] : memref<1x256xf32, #tpu.memory_space<vmem>>, vector<1x256xf32>
    %4 = vector.broadcast %3 : vector<1x256xf32> to vector<256x256xf32>
    %5 = arith.addf %2, %4 : vector<256x256xf32>
    %cst_5 = arith.constant 0.000000e+00 : f32
    %6 = vector.broadcast %cst_5 : f32 to vector<256x256xf32>
    %7 = arith.maximumf %5, %6 : vector<256x256xf32>
    %8 = arith.truncf %7 : vector<256x256xf32> to vector<256x256xbf16>
    %c0_6 = arith.constant 0 : index
    %c0_7 = arith.constant 0 : index
    %9 = vector.load %arg4[%c0_6, %c0_7] : memref<256x256xbf16, #tpu.memory_space<vmem>>, vector<256x256xbf16>
    %cst_8 = arith.constant dense<0.000000e+00> : vector<256x256xf32>
    %10 = tpu.matmul %8, %9, %cst_8 {dimension_numbers = #tpu.dot_dimension_numbers<[1], [0], [0], [1], [0, 0, 1, 1], [], []>} : vector<256x256xbf16>, vector<256x256xbf16>, vector<256x256xf32> -> vector<256x256xf32>
    %c0_9 = arith.constant 0 : index
    %c0_10 = arith.constant 0 : index
    %11 = vector.load %arg5[%c0_9, %c0_10] : memref<1x256xf32, #tpu.memory_space<vmem>>, vector<1x256xf32>
    %12 = vector.broadcast %11 : vector<1x256xf32> to vector<256x256xf32>
    %13 = arith.addf %10, %12 : vector<256x256xf32>
    %cst_11 = arith.constant 0.000000e+00 : f32
    %14 = vector.broadcast %cst_11 : f32 to vector<256x256xf32>
    %15 = arith.maximumf %13, %14 : vector<256x256xf32>
    %16 = arith.truncf %15 : vector<256x256xf32> to vector<256x256xbf16>
    %c0_12 = arith.constant 0 : index
    %c0_13 = arith.constant 0 : index
    %17 = vector.load %arg6[%c0_12, %c0_13] : memref<256x128xbf16, #tpu.memory_space<vmem>>, vector<256x128xbf16>
    %cst_14 = arith.constant dense<0.000000e+00> : vector<256x128xf32>
    %18 = tpu.matmul %16, %17, %cst_14 {dimension_numbers = #tpu.dot_dimension_numbers<[1], [0], [0], [1], [0, 0, 1, 1], [], []>} : vector<256x256xbf16>, vector<256x128xbf16>, vector<256x128xf32> -> vector<256x128xf32>
    %c0_15 = arith.constant 0 : index
    %c0_16 = arith.constant 0 : index
    %19 = vector.load %arg7[%c0_15, %c0_16] : memref<1x128xf32, #tpu.memory_space<vmem>>, vector<1x128xf32>
    %20 = vector.broadcast %19 : vector<1x128xf32> to vector<256x128xf32>
    %21 = arith.addf %18, %20 : vector<256x128xf32>
    %c0_17 = arith.constant 0 : index
    %c0_18 = arith.constant 0 : index
    %22 = vector.load %arg8[%c0_17, %c0_18] : memref<256x128xf32, #tpu.memory_space<vmem>>, vector<256x128xf32>
    tpu.vector_store %arg8[%c0_17, %c0_18], %21 {strides = array<i32>} : memref<256x128xf32, #tpu.memory_space<vmem>>, vector<256x128xf32>,
    return
  }
  func.func @transform_0(%arg0: i32) -> (i32, i32) {
    %c0_i32 = arith.constant 0 : i32
    %c0_i32_0 = arith.constant 0 : i32
    return %arg0, %c0_i32 : i32, i32
  }
  func.func @transform_1(%arg0: i32) -> (i32, i32) {
    %c0_i32 = arith.constant 0 : i32
    %c0_i32_0 = arith.constant 0 : i32
    %c0_i32_1 = arith.constant 0 : i32
    return %c0_i32, %c0_i32_0 : i32, i32
  }
  func.func @transform_2(%arg0: i32) -> (i32, i32) {
    %c0_i32 = arith.constant 0 : i32
    %c0_i32_0 = arith.constant 0 : i32
    %c0_i32_1 = arith.constant 0 : i32
    return %c0_i32, %c0_i32_0 : i32, i32
  }
  func.func @transform_3(%arg0: i32) -> (i32, i32) {
    %c0_i32 = arith.constant 0 : i32
    %c0_i32_0 = arith.constant 0 : i32
    %c0_i32_1 = arith.constant 0 : i32
    return %c0_i32, %c0_i32_0 : i32, i32
  }
  func.func @transform_4(%arg0: i32) -> (i32, i32) {
    %c0_i32 = arith.constant 0 : i32
    %c0_i32_0 = arith.constant 0 : i32
    %c0_i32_1 = arith.constant 0 : i32
    return %c0_i32, %c0_i32_0 : i32, i32
  }
  func.func @transform_5(%arg0: i32) -> (i32, i32) {
    %c0_i32 = arith.constant 0 : i32
    %c0_i32_0 = arith.constant 0 : i32
    %c0_i32_1 = arith.constant 0 : i32
    return %c0_i32, %c0_i32_0 : i32, i32
  }
  func.func @transform_6(%arg0: i32) -> (i32, i32) {
    %c0_i32 = arith.constant 0 : i32
    %c0_i32_0 = arith.constant 0 : i32
    %c0_i32_1 = arith.constant 0 : i32
    return %c0_i32, %c0_i32_0 : i32, i32
  }
  func.func @transform_7(%arg0: i32) -> (i32, i32) {
    %c0_i32 = arith.constant 0 : i32
    %c0_i32_0 = arith.constant 0 : i32
    return %arg0, %c0_i32 : i32, i32
  }
}

</mosaic_0001>

<bundles_post_ra>
// kernel: mnist_net_forward.1
= control target key start
LH: loop header
LB: loop body
LE: loop exit
PB: predicated region body
PF: predicated region fallthrough
CT: control target
= control target key end

     0   :  { %s5274_s1 = inlined_call_operand.vmem [shape: bf16[896,256], index: 1, kind: input, shape index: {}]   ;;  %s5275_s0 = inlined_call_operand.vmem [shape: bf16[256,896], index: 0, kind: input, shape index: {}]   ;;  %s5276_s3 = inlined_call_operand.vmem [shape: bf16[256,256], index: 3, kind: input, shape index: {}]   ;;  %s5277_s2 = inlined_call_operand.vmem [shape: f32[1,256], index: 2, kind: input, shape index: {}]   ;;  %s5278_s5 = inlined_call_operand.vmem [shape: bf16[256,128], index: 5, kind: input, shape index: {}]   ;;  %s5279_s4 = inlined_call_operand.vmem [shape: f32[1,256], index: 4, kind: input, shape index: {}]   ;;  %s5280_s6 = inlined_call_operand.vmem [shape: f32[1,128], index: 6, kind: input, shape index: {}]   ;;  %s5281_s7 = inlined_call_operand.vmem [shape: f32[256,128], index: 7, kind: output, shape index: {}]  }
   0x1   :  { %v3494_v0 = vld [vmem:[%s5274_s1 + $0x74] ss:$8 sps:$4 sm:$0xff]   ;;  %v3498_v2 = vld [vmem:[%s5274_s1 + $0x70] ss:$8 sps:$4 sm:$0xff]   ;;  %v3500_v4 = vld [vmem:[%s5274_s1 + $0x64] ss:$8 sps:$4 sm:$0xff]  }
   0x2   :  { %v3496_v1 = vld [vmem:[%s5274_s1 + $0x174] ss:$8 sps:$4 sm:$0xff]   ;;  %1415 = vmatprep.subr.bf16.mxu0 %v3494_v0  ;;  %v3499_v3 = vld [vmem:[%s5274_s1 + $0x170] ss:$8 sps:$4 sm:$0xff]   ;;  %v3502_v5 = vld [vmem:[%s5274_s1 + $0x164] ss:$8 sps:$4 sm:$0xff]  }
   0x3   :  { %1608 = vmatprep.subr.bf16.mxu1 %v3496_v1  ;;  %1416 = vmatpush1.bf16.msra.mxu0 %v3498_v2  ;;  %v3504_v6 = vld [vmem:[%s5274_s1 + $0x60] ss:$8 sps:$4 sm:$0xff]   ;;  %v3506_v8 = vld [vmem:[%s5274_s1 + $0x54] ss:$8 sps:$4 sm:$0xff]   ;;  %v3510_v10 = vld [vmem:[%s5274_s1 + $0x50] ss:$8 sps:$4 sm:$0xff]  }
   0x4   :  { %1609 = vmatpush1.bf16.msra.mxu1 %v3499_v3  ;;  %1417 = vmatprep.subr.bf16.mxu0 %v3500_v4  ;;  %v3505_v7 = vld [vmem:[%s5274_s1 + $0x160] ss:$8 sps:$4 sm:$0xff]   ;;  %v3508_v9 = vld [vmem:[%s5274_s1 + $0x154] ss:$8 sps:$4 sm:$0xff]   ;;  %v3511_v11 = vld [vmem:[%s5274_s1 + $0x150] ss:$8 sps:$4 sm:$0xff]  }
   0x5   :  { %1610 = vmatprep.subr.bf16.mxu1 %v3502_v5  ;;  %v3512_v12 = vld [vmem:[%s5274_s1 + $0x44] ss:$8 sps:$4 sm:$0xff]   ;;  %v3516_v14 = vld [vmem:[%s5274_s1 + $0x40] ss:$8 sps:$4 sm:$0xff]   ;;  %v3518_v16 = vld [vmem:[%s5274_s1 + $0x34] ss:$8 sps:$4 sm:$0xff]  }
   0x6   :  { %v3514_v13 = vld [vmem:[%s5274_s1 + $0x144] ss:$8 sps:$4 sm:$0xff]   ;;  %v3517_v15 = vld [vmem:[%s5274_s1 + $0x140] ss:$8 sps:$4 sm:$0xff]   ;;  %v3520_v17 = vld [vmem:[%s5274_s1 + $0x134] ss:$8 sps:$4 sm:$0xff]  }
   0x7   :  { %1418 = vmatpush1.bf16.msra.mxu0 %v3504_v6  ;;  %v3522_v18 = vld [vmem:[%s5274_s1 + $0x30] ss:$8 sps:$4 sm:$0xff]   ;;  %v3524_v20 = vld [vmem:[%s5274_s1 + $0x24] ss:$8 sps:$4 sm:$0xff]   ;;  %v3528_v22 = vld [vmem:[%s5274_s1 + $0x20] ss:$8 sps:$4 sm:$0xff]  }
   0x8   :  { %1611 = vmatpush1.bf16.msra.mxu1 %v3505_v7  ;;  %1419 = vmatprep.subr.bf16.mxu0 %v3506_v8  ;;  %v3523_v19 = vld [vmem:[%s5274_s1 + $0x130] ss:$8 sps:$4 sm:$0xff]   ;;  %v3526_v21 = vld [vmem:[%s5274_s1 + $0x124] ss:$8 sps:$4 sm:$0xff]   ;;  %v3529_v23 = vld [vmem:[%s5274_s1 + $0x120] ss:$8 sps:$4 sm:$0xff]  }
   0x9   :  { %1612 = vmatprep.subr.bf16.mxu1 %v3508_v9  ;;  %v3530_v24 = vld [vmem:[%s5274_s1 + $0x14] ss:$8 sps:$4 sm:$0xff]   ;;  %v3534_v26 = vld [vmem:[%s5274_s1 + $0x10] ss:$8 sps:$4 sm:$0xff]   ;;  %v3536_v28 = vld [vmem:[%s5274_s1 + $0x4] ss:$8 sps:$4 sm:$0xff]  }
   0xa   :  { %v3532_v25 = vld [vmem:[%s5274_s1 + $0x114] ss:$8 sps:$4 sm:$0xff]   ;;  %v3535_v27 = vld [vmem:[%s5274_s1 + $0x110] ss:$8 sps:$4 sm:$0xff]   ;;  %v3538_v29 = vld [vmem:[%s5274_s1 + $0x104] ss:$8 sps:$4 sm:$0xff]  }
   0xb   :  { %1420 = vmatpush1.bf16.msra.mxu0 %v3510_v10  ;;  %v3540_v30 = vld [vmem:[%s5274_s1] ss:$8 sps:$4 sm:$0xff]   ;;  %v3542_v32 = vld [vmem:[%s5274_s1 + $0xf4] ss:$8 sps:$4 sm:$0xff]   ;;  %v3546_v34 = vld [vmem:[%s5274_s1 + $0xf0] ss:$8 sps:$4 sm:$0xff]  }
   0xc   :  { %1613 = vmatpush1.bf16.msra.mxu1 %v3511_v11  ;;  %1421 = vmatprep.subr.bf16.mxu0 %v3512_v12  ;;  %v3541_v31 = vld [vmem:[%s5274_s1 + $0x100] ss:$8 sps:$4 sm:$0xff]   ;;  %v3544_v33 = vld [vmem:[%s5274_s1 + $0x1f4] ss:$8 sps:$4 sm:$0xff]   ;;  %v3547_v35 = vld [vmem:[%s5274_s1 + $0x1f0] ss:$8 sps:$4 sm:$0xff]  }
   0xd   :  { %1614 = vmatprep.subr.bf16.mxu1 %v3514_v13  ;;  %v3548_v36 = vld [vmem:[%s5274_s1 + $0xe4] ss:$8 sps:$4 sm:$0xff]   ;;  %v3552_v38 = vld [vmem:[%s5274_s1 + $0xe0] ss:$8 sps:$4 sm:$0xff]   ;;  %v3554_v40 = vld [vmem:[%s5274_s1 + $0xd4] ss:$8 sps:$4 sm:$0xff]  }
   0xe   :  { %v3550_v37 = vld [vmem:[%s5274_s1 + $0x1e4] ss:$8 sps:$4 sm:$0xff]   ;;  %v3553_v39 = vld [vmem:[%s5274_s1 + $0x1e0] ss:$8 sps:$4 sm:$0xff]   ;;  %v3556_v41 = vld [vmem:[%s5274_s1 + $0x1d4] ss:$8 sps:$4 sm:$0xff]  }
   0xf   :  { %1422 = vmatpush1.bf16.msra.mxu0 %v3516_v14  ;;  %v3558_v42 = vld [vmem:[%s5274_s1 + $0xd0] ss:$8 sps:$4 sm:$0xff]   ;;  %v3560_v44 = vld [vmem:[%s5274_s1 + $0xc4] ss:$8 sps:$4 sm:$0xff]   ;;  %v3564_v46 = vld [vmem:[%s5274_s1 + $0xc0] ss:$8 sps:$4 sm:$0xff]  }
  0x10   :  { %1615 = vmatpush1.bf16.msra.mxu1 %v3517_v15  ;;  %1423 = vmatprep.subr.bf16.mxu0 %v3518_v16  ;;  %v3559_v43 = vld [vmem:[%s5274_s1 + $0x1d0] ss:$8 sps:$4 sm:$0xff]   ;;  %v3562_v45 = vld [vmem:[%s5274_s1 + $0x1c4] ss:$8 sps:$4 sm:$0xff]   ;;  %v3565_v47 = vld [vmem:[%s5274_s1 + $0x1c0] ss:$8 sps:$4 sm:$0xff]  }
  0x11   :  { %1616 = vmatprep.subr.bf16.mxu1 %v3520_v17  ;;  %v3566_v48 = vld [vmem:[%s5274_s1 + $0xb4] ss:$8 sps:$4 sm:$0xff]   ;;  %v3592_v49 = vld [vmem:[%s5275_s0 + $0x4] ss:$28 sps:$4 sm:$0xff]   ;;  %v3595_v51 = vld [vmem:[%s5275_s0 + $0xc] ss:$28 sps:$4 sm:$0xff]  }
  0x12   :  { %v3568_v50 = vld [vmem:[%s5274_s1 + $0x1b4] ss:$8 sps:$4 sm:$0xff]   ;;  %1447 = vmatprep.mubr.bf16.mxu0 %v3592_v49  ;;  %v3570_v52 = vld [vmem:[%s5274_s1 + $0xb0] ss:$8 sps:$4 sm:$0xff]   ;;  %1640 = vmatprep.mubr.bf16.mxu1 %v3595_v51  ;;  %v3572_v54 = vld [vmem:[%s5274_s1 + $0xa4] ss:$8 sps:$4 sm:$0xff]  }
  0x13   :  { %1424 = vmatpush1.bf16.msra.mxu0 %v3522_v18  ;;  %v3571_v53 = vld [vmem:[%s5274_s1 + $0x1b0] ss:$8 sps:$4 sm:$0xff]   ;;  %v3574_v55 = vld [vmem:[%s5274_s1 + $0x1a4] ss:$8 sps:$4 sm:$0xff]   ;;  %v3576_v56 = vld [vmem:[%s5274_s1 + $0xa0] ss:$8 sps:$4 sm:$0xff]  }
  0x14   :  { %1617 = vmatpush1.bf16.msra.mxu1 %v3523_v19  ;;  %1425 = vmatprep.subr.bf16.mxu0 %v3524_v20  ;;  %v3577_v57 = vld [vmem:[%s5274_s1 + $0x1a0] ss:$8 sps:$4 sm:$0xff]   ;;  %v3578_v58 = vld [vmem:[%s5274_s1 + $0x94] ss:$8 sps:$4 sm:$0xff]   ;;  %v3582_v60 = vld [vmem:[%s5274_s1 + $0x90] ss:$8 sps:$4 sm:$0xff]  }
  0x15   :  { %1618 = vmatprep.subr.bf16.mxu1 %v3526_v21  ;;  %v3580_v59 = vld [vmem:[%s5274_s1 + $0x194] ss:$8 sps:$4 sm:$0xff]   ;;  %v3583_v61 = vld [vmem:[%s5274_s1 + $0x190] ss:$8 sps:$4 sm:$0xff]   ;;  %v3584_v62 = vld [vmem:[%s5274_s1 + $0x84] ss:$8 sps:$4 sm:$0xff]  }
  0x16   :  { %v3586_v63 = vld [vmem:[%s5274_s1 + $0x184] ss:$8 sps:$4 sm:$0xff]   ;;  %v3588_v0 = vld [vmem:[%s5274_s1 + $0x80] ss:$8 sps:$4 sm:$0xff]   ;;  %v3598_v2 = vld [vmem:[%s5274_s1 + $0x274] ss:$8 sps:$4 sm:$0xff]  }
  0x17   :  { %1426 = vmatpush1.bf16.msra.mxu0 %v3528_v22  ;;  %v3589_v1 = vld [vmem:[%s5274_s1 + $0x180] ss:$8 sps:$4 sm:$0xff]   ;;  %v3601_v3 = vld [vmem:[%s5274_s1 + $0x374] ss:$8 sps:$4 sm:$0xff]   ;;  %v3596_v6 = vld [vmem:[%s5274_s1 + $0x270] ss:$8 sps:$4 sm:$0xff]  }
  0x18   :  { %1619 = vmatpush1.bf16.msra.mxu1 %v3529_v23  ;;  %1427 = vmatprep.subr.bf16.mxu0 %v3530_v24  ;;  %v3590_v4 = vld [vmem:[%s5275_s0] ss:$28 sps:$4 sm:$0xff]   ;;  %v3593_v5 = vld [vmem:[%s5275_s0 + $0x8] ss:$28 sps:$4 sm:$0xff]   ;;  %v3599_v7 = vld [vmem:[%s5274_s1 + $0x370] ss:$8 sps:$4 sm:$0xff]  }
  0x19   :  { %1620 = vmatprep.subr.bf16.mxu1 %v3532_v25  ;;  %v3602_v8 = vld [vmem:[%s5275_s0 + $0x3c] ss:$28 sps:$4 sm:$0xff]   ;;  %v3604_v9 = vld [vmem:[%s5275_s0 + $0x44] ss:$28 sps:$4 sm:$0xff]   ;;  %v3611_v18 = vld [vmem:[%s5275_s0 + $0x74] ss:$28 sps:$4 sm:$0xff]  }
  0x1a   :  { %v3610_v10 = vld [vmem:[%s5274_s1 + $0x264] ss:$8 sps:$4 sm:$0xff]   ;;  %v3608_v12 = vld [vmem:[%s5274_s1 + $0x260] ss:$8 sps:$4 sm:$0xff]   ;;  %v3619_v13 = vld [vmem:[%s5274_s1 + $0x254] ss:$8 sps:$4 sm:$0xff]  }
  0x1b   :  { %1428 = vmatpush1.bf16.msra.mxu0 %v3534_v26  ;;  %v3622_v11 = vld [vmem:[%s5274_s1 + $0x364] ss:$8 sps:$4 sm:$0xff]   ;;  %v3620_v14 = vld [vmem:[%s5274_s1 + $0x360] ss:$8 sps:$4 sm:$0xff]   ;;  %v3643_v15 = vld [vmem:[%s5274_s1 + $0x354] ss:$8 sps:$4 sm:$0xff]  }
  0x1c   :  { %1621 = vmatpush1.bf16.msra.mxu1 %v3535_v27  ;;  %1429 = vmatprep.subr.bf16.mxu0 %v3536_v28  ;;  %v3606_v16 = vld [vmem:[%s5275_s0 + $0x38] ss:$28 sps:$4 sm:$0xff]   ;;  %v3607_v17 = vld [vmem:[%s5275_s0 + $0x40] ss:$28 sps:$4 sm:$0xff]   ;;  %v3631_v22 = vld [vmem:[%s5274_s1 + $0x244] ss:$8 sps:$4 sm:$0xff]  }
  0x1d   :  { %1622 = vmatprep.subr.bf16.mxu1 %v3538_v29  ;;  %v3613_v19 = vld [vmem:[%s5275_s0 + $0x7c] ss:$28 sps:$4 sm:$0xff]   ;;  %v3664_v23 = vld [vmem:[%s5274_s1 + $0x344] ss:$8 sps:$4 sm:$0xff]   ;;  %v3629_v24 = vld [vmem:[%s5274_s1 + $0x240] ss:$8 sps:$4 sm:$0xff]  }
  0x1e   :  { %v3617_v20 = vld [vmem:[%s5274_s1 + $0x250] ss:$8 sps:$4 sm:$0xff]   ;;  %v3662_v25 = vld [vmem:[%s5274_s1 + $0x340] ss:$8 sps:$4 sm:$0xff]   ;;  %v3640_v27 = vld [vmem:[%s5274_s1 + $0x234] ss:$8 sps:$4 sm:$0xff]  }
  0x1f   :  { %1430 = vmatpush1.bf16.msra.mxu0 %v3540_v30  ;;  %v3641_v21 = vld [vmem:[%s5274_s1 + $0x350] ss:$8 sps:$4 sm:$0xff]   ;;  %v3623_v29 = vld [vmem:[%s5275_s0 + $0xac] ss:$28 sps:$4 sm:$0xff]  }
  0x20   :  { %1623 = vmatpush1.bf16.msra.mxu1 %v3541_v31  ;;  %1431 = vmatprep.subr.bf16.mxu0 %v3542_v32  ;;  %v3615_v26 = vld [vmem:[%s5275_s0 + $0x70] ss:$28 sps:$4 sm:$0xff]   ;;  %v3616_v28 = vld [vmem:[%s5275_s0 + $0x78] ss:$28 sps:$4 sm:$0xff]  }
  0x21   :  { %1624 = vmatprep.subr.bf16.mxu1 %v3544_v33  ;;  %v3625_v30 = vld [vmem:[%s5275_s0 + $0xb4] ss:$28 sps:$4 sm:$0xff]   ;;  %v3652_v32 = vld [vmem:[%s5274_s1 + $0x224] ss:$8 sps:$4 sm:$0xff]   ;;  %v3650_v33 = vld [vmem:[%s5274_s1 + $0x220] ss:$8 sps:$4 sm:$0xff]  }
  0x22   :  { %v3638_v31 = vld [vmem:[%s5274_s1 + $0x230] ss:$8 sps:$4 sm:$0xff]  }
  0x23   :  { %1432 = vmatpush2.bf16.msra.mxu0 %v3546_v34  ;;  %v3683_v34 = vld [vmem:[%s5274_s1 + $0x330] ss:$8 sps:$4 sm:$0xff]  }
  0x24   :  { %1625 = vmatpush2.bf16.msra.mxu1 %v3547_v35  ;;  %1433 = vmatprep.subr.bf16.mxu0 %v3548_v36  ;;  %v3685_v35 = vld [vmem:[%s5274_s1 + $0x334] ss:$8 sps:$4 sm:$0xff]   ;;  %v3680_v51 = vld [vmem:[%s5274_s1 + $0x2f0] ss:$8 sps:$4 sm:$0xff]  }
  0x25   :  { %1626 = vmatprep.subr.bf16.mxu1 %v3550_v37  ;;  %v3661_v36 = vld [vmem:[%s5274_s1 + $0x214] ss:$8 sps:$4 sm:$0xff]   ;;  %v3627_v37 = vld [vmem:[%s5275_s0 + $0xa8] ss:$28 sps:$4 sm:$0xff]  }
  0x26   :  { %v3644_v49 = vld [vmem:[%s5275_s0 + $0x11c] ss:$28 sps:$4 sm:$0xff]  }
  0x27   :  { %1434 = vmatpush2.bf16.msra.mxu0 %v3552_v38  ;;  %v3628_v38 = vld [vmem:[%s5275_s0 + $0xb0] ss:$28 sps:$4 sm:$0xff]  }
  0x28   :  { %1627 = vmatpush2.bf16.msra.mxu1 %v3553_v39  ;;  %1435 = vmatprep.subr.bf16.mxu0 %v3554_v40  ;;  %v3632_v39 = vld [vmem:[%s5275_s0 + $0xe4] ss:$28 sps:$4 sm:$0xff]   ;;  %v3634_v40 = vld [vmem:[%s5275_s0 + $0xec] ss:$28 sps:$4 sm:$0xff]  }
  0x29   :  { %1628 = vmatprep.subr.bf16.mxu1 %v3556_v41  ;;  %v3659_v41 = vld [vmem:[%s5274_s1 + $0x210] ss:$8 sps:$4 sm:$0xff]  }
  0x2b   :  { %1436 = vmatpush2.bf16.msra.mxu0 %v3558_v42  ;;  %v3673_v42 = vld [vmem:[%s5274_s1 + $0x204] ss:$8 sps:$4 sm:$0xff]  }
  0x2c   :  { %1629 = vmatpush2.bf16.msra.mxu1 %v3559_v43  ;;  %1437 = vmatprep.subr.bf16.mxu0 %v3560_v44  ;;  %v3671_v43 = vld [vmem:[%s5274_s1 + $0x200] ss:$8 sps:$4 sm:$0xff]  }
  0x2d   :  { %1630 = vmatprep.subr.bf16.mxu1 %v3562_v45  ;;  %v3636_v44 = vld [vmem:[%s5275_s0 + $0xe0] ss:$28 sps:$4 sm:$0xff]  }
  0x2e   :  { %v3682_v45 = vld [vmem:[%s5274_s1 + $0x2f4] ss:$8 sps:$4 sm:$0xff]  }
  0x2f   :  { %1438 = vmatpush2.bf16.msra.mxu0 %v3564_v46  ;;  %v3704_v46 = vld [vmem:[%s5274_s1 + $0x320] ss:$8 sps:$4 sm:$0xff]  }
  0x30   :  { %1631 = vmatpush2.bf16.msra.mxu1 %v3565_v47  ;;  %1439 = vmatprep.subr.bf16.mxu0 %v3566_v48  ;;  %v3706_v47 = vld [vmem:[%s5274_s1 + $0x324] ss:$8 sps:$4 sm:$0xff]  }
  0x31   :  { %1632 = vmatprep.subr.bf16.mxu1 %v3568_v50  ;;  %v3637_v48 = vld [vmem:[%s5275_s0 + $0xe8] ss:$28 sps:$4 sm:$0xff]  }
  0x32   :  { %v3646_v50 = vld [vmem:[%s5275_s0 + $0x124] ss:$28 sps:$4 sm:$0xff]  }
  0x33   :  { %1440 = vmatpush2.bf16.msra.mxu0 %v3570_v52  ;;  %v3694_v52 = vld [vmem:[%s5274_s1 + $0x2e4] ss:$8 sps:$4 sm:$0xff]  }
  0x34   :  { %1633 = vmatpush2.bf16.msra.mxu1 %v3571_v53  ;;  %1441 = vmatprep.subr.bf16.mxu0 %v3572_v54  ;;  %v3648_v53 = vld [vmem:[%s5275_s0 + $0x118] ss:$28 sps:$4 sm:$0xff]   ;;  %v3649_v54 = vld [vmem:[%s5275_s0 + $0x120] ss:$28 sps:$4 sm:$0xff]  }
  0x35   :  { %1634 = vmatprep.subr.bf16.mxu1 %v3574_v55  ;;  %v3692_v55 = vld [vmem:[%s5274_s1 + $0x2e0] ss:$8 sps:$4 sm:$0xff]  }
  0x37   :  { %1442 = vmatpush2.bf16.msra.mxu0 %v3576_v56  ;;  %v3653_v56 = vld [vmem:[%s5275_s0 + $0x154] ss:$28 sps:$4 sm:$0xff]  }
  0x38   :  { %1635 = vmatpush2.bf16.msra.mxu1 %v3577_v57  ;;  %1443 = vmatprep.subr.bf16.mxu0 %v3578_v58  ;;  %v3703_v57 = vld [vmem:[%s5274_s1 + $0x2d4] ss:$8 sps:$4 sm:$0xff]   ;;  %v3725_v58 = vld [vmem:[%s5274_s1 + $0x310] ss:$8 sps:$4 sm:$0xff]  }
  0x39   :  { %1636 = vmatprep.subr.bf16.mxu1 %v3580_v59  ;;  %v3727_v59 = vld [vmem:[%s5274_s1 + $0x314] ss:$8 sps:$4 sm:$0xff]  }
  0x3b   :  { %1444 = vmatpush2.bf16.msra.mxu0 %v3582_v60  ;;  %v3655_v60 = vld [vmem:[%s5275_s0 + $0x15c] ss:$28 sps:$4 sm:$0xff]  }
  0x3c   :  { %1637 = vmatpush2.bf16.msra.mxu1 %v3583_v61  ;;  %1445 = vmatprep.subr.bf16.mxu0 %v3584_v62  ;;  %v3701_v61 = vld [vmem:[%s5274_s1 + $0x2d0] ss:$8 sps:$4 sm:$0xff]   ;;  %v3715_v62 = vld [vmem:[%s5274_s1 + $0x2c4] ss:$8 sps:$4 sm:$0xff]  }
  0x3d   :  { %1638 = vmatprep.subr.bf16.mxu1 %v3586_v63  ;;  %v3657_v63 = vld [vmem:[%s5275_s0 + $0x150] ss:$28 sps:$4 sm:$0xff]  }
  0x3f   :  { %1446 = vmatpush2.bf16.msra.mxu0 %v3588_v0  ;;  %v3658_v0 = vld [vmem:[%s5275_s0 + $0x158] ss:$28 sps:$4 sm:$0xff]  }
  0x40   :  { %1639 = vmatpush2.bf16.msra.mxu1 %v3589_v1  ;;  %1801 = vmatprep.subr.bf16.mxu0 %v3598_v2  ;;  %v3713_v1 = vld [vmem:[%s5274_s1 + $0x2c0] ss:$8 sps:$4 sm:$0xff]  }
  0x41   :  { %1994 = vmatprep.subr.bf16.mxu1 %v3601_v3  ;;  %v3665_v2 = vld [vmem:[%s5275_s0 + $0x18c] ss:$28 sps:$4 sm:$0xff]   ;;  %v3724_v3 = vld [vmem:[%s5274_s1 + $0x2b4] ss:$8 sps:$4 sm:$0xff]  }
  0x42   :  { %1448 = vmatmul.mubr.bf16.vlgmr.msra.gmra.mxu0 %v3590_v4  ;;  %v3667_v4 = vld [vmem:[%s5275_s0 + $0x194] ss:$28 sps:$4 sm:$0xff]  }
  0x43   :  { %1641 = vmatmul.mubr.bf16.vlgmr.msra.gmra.mxu1 %v3593_v5  ;;  %1802 = vmatpush1.bf16.msra.mxu0 %v3596_v6  ;;  %v3722_v5 = vld [vmem:[%s5274_s1 + $0x2b0] ss:$8 sps:$4 sm:$0xff]   ;;  %v3736_v6 = vld [vmem:[%s5274_s1 + $0x2a4] ss:$8 sps:$4 sm:$0xff]  }
  0x44   :  { %1995 = vmatpush1.bf16.msra.mxu1 %v3599_v7  ;;  %1457 = vmatprep.mubr.bf16.mxu0 %v3602_v8  ;;  %v3748_v7 = vld [vmem:[%s5274_s1 + $0x304] ss:$8 sps:$4 sm:$0xff]   ;;  %v3746_v8 = vld [vmem:[%s5274_s1 + $0x300] ss:$8 sps:$4 sm:$0xff]  }
  0x45   :  { %1650 = vmatprep.mubr.bf16.mxu1 %v3604_v9  ;;  %1803 = vmatprep.subr.bf16.mxu0 %v3610_v10  ;;  %v3734_v9 = vld [vmem:[%s5274_s1 + $0x2a0] ss:$8 sps:$4 sm:$0xff]  }
  0x46   :  { %1996 = vmatprep.subr.bf16.mxu1 %v3622_v11  ;;  %v3669_v10 = vld [vmem:[%s5275_s0 + $0x188] ss:$28 sps:$4 sm:$0xff]   ;;  %v3745_v11 = vld [vmem:[%s5274_s1 + $0x294] ss:$8 sps:$4 sm:$0xff]  }
  0x47   :  { %1804 = vmatpush1.bf16.msra.mxu0 %v3608_v12  ;;  %v3670_v12 = vld [vmem:[%s5275_s0 + $0x190] ss:$28 sps:$4 sm:$0xff]  }
  0x48   :  { %1997 = vmatpush1.bf16.msra.mxu1 %v3620_v14  ;;  %1805 = vmatprep.subr.bf16.mxu0 %v3619_v13  ;;  %v3674_v13 = vld [vmem:[%s5275_s0 + $0x1c4] ss:$28 sps:$4 sm:$0xff]   ;;  %v3676_v14 = vld [vmem:[%s5275_s0 + $0x1cc] ss:$28 sps:$4 sm:$0xff]  }
  0x49   :  { %1998 = vmatprep.subr.bf16.mxu1 %v3643_v15  ;;  %v3743_v15 = vld [vmem:[%s5274_s1 + $0x290] ss:$8 sps:$4 sm:$0xff]  }
  0x4a   :  { %1458 = vmatmul.mubr.bf16.gmra.mxu0 %v3606_v16  ;;  %v3757_v16 = vld [vmem:[%s5274_s1 + $0x284] ss:$8 sps:$4 sm:$0xff]  }
  0x4b   :  { %1651 = vmatmul.mubr.bf16.gmra.mxu1 %v3607_v17  ;;  %1467 = vmatprep.mubr.bf16.mxu0 %v3611_v18  ;;  %v3755_v17 = vld [vmem:[%s5274_s1 + $0x280] ss:$8 sps:$4 sm:$0xff]  }
  0x4c   :  { %1660 = vmatprep.mubr.bf16.mxu1 %v3613_v19  ;;  %1806 = vmatpush1.bf16.msra.mxu0 %v3617_v20  ;;  %v3678_v18 = vld [vmem:[%s5275_s0 + $0x1c0] ss:$28 sps:$4 sm:$0xff]   ;;  %v3679_v19 = vld [vmem:[%s5275_s0 + $0x1c8] ss:$28 sps:$4 sm:$0xff]  }
  0x4d   :  { %1999 = vmatpush1.bf16.msra.mxu1 %v3641_v21  ;;  %1807 = vmatprep.subr.bf16.mxu0 %v3631_v22  ;;  %v3686_v20 = vld [vmem:[%s5275_s0 + $0x1fc] ss:$28 sps:$4 sm:$0xff]   ;;  %v3688_v21 = vld [vmem:[%s5275_s0 + $0x204] ss:$28 sps:$4 sm:$0xff]  }
  0x4e   :  { %2000 = vmatprep.subr.bf16.mxu1 %v3664_v23  ;;  %v3690_v22 = vld [vmem:[%s5275_s0 + $0x1f8] ss:$28 sps:$4 sm:$0xff]   ;;  %v3691_v23 = vld [vmem:[%s5275_s0 + $0x200] ss:$28 sps:$4 sm:$0xff]  }
  0x50   :  { %1808 = vmatpush1.bf16.msra.mxu0 %v3629_v24  ;;  %v3695_v24 = vld [vmem:[%s5275_s0 + $0x234] ss:$28 sps:$4 sm:$0xff]  }
  0x51   :  { %2001 = vmatpush1.bf16.msra.mxu1 %v3662_v25  ;;  %1809 = vmatprep.subr.bf16.mxu0 %v3640_v27  ;;  %v3697_v25 = vld [vmem:[%s5275_s0 + $0x23c] ss:$28 sps:$4 sm:$0xff]  }
  0x52   :  { %1468 = vmatmul.mubr.bf16.gmra.mxu0 %v3615_v26  ;;  %2002 = vmatprep.subr.bf16.mxu1 %v3685_v35  ;;  %v3699_v26 = vld [vmem:[%s5275_s0 + $0x230] ss:$28 sps:$4 sm:$0xff]   ;;  %v3700_v27 = vld [vmem:[%s5275_s0 + $0x238] ss:$28 sps:$4 sm:$0xff]   ;;  %v3720_v35 = vld [vmem:[%s5275_s0 + $0x2a0] ss:$28 sps:$4 sm:$0xff]  }
  0x53   :  { %1661 = vmatmul.mubr.bf16.gmra.mxu1 %v3616_v28  ;;  %1477 = vmatprep.mubr.bf16.mxu0 %v3623_v29  ;;  %v3707_v28 = vld [vmem:[%s5275_s0 + $0x26c] ss:$28 sps:$4 sm:$0xff]   ;;  %v3709_v29 = vld [vmem:[%s5275_s0 + $0x274] ss:$28 sps:$4 sm:$0xff]  }
  0x54   :  { %1670 = vmatprep.mubr.bf16.mxu1 %v3625_v30  ;;  %1810 = vmatpush1.bf16.msra.mxu0 %v3638_v31  ;;  %v3711_v30 = vld [vmem:[%s5275_s0 + $0x268] ss:$28 sps:$4 sm:$0xff]   ;;  %v3712_v31 = vld [vmem:[%s5275_s0 + $0x270] ss:$28 sps:$4 sm:$0xff]  }
  0x55   :  { %1811 = vmatprep.subr.bf16.mxu0 %v3652_v32  ;;  %2003 = vmatpush1.bf16.msra.mxu1 %v3683_v34  ;;  %v3716_v32 = vld [vmem:[%s5275_s0 + $0x2a4] ss:$28 sps:$4 sm:$0xff]   ;;  %v3804_v34 = vld [vmem:[%s5276_s3 + $0x74] ss:$8 sps:$4 sm:$0xff]  }
  0x56   :  { %2004 = vmatprep.subr.bf16.mxu1 %v3706_v47  ;;  %v3753_v47 = vld [vmem:[%s5275_s0 + $0x348] ss:$28 sps:$4 sm:$0xff]  }
  0x58   :  { %1812 = vmatpush1.bf16.msra.mxu0 %v3650_v33  ;;  %v3718_v33 = vld [vmem:[%s5275_s0 + $0x2ac] ss:$28 sps:$4 sm:$0xff]  }
  0x59   :  { %1813 = vmatprep.subr.bf16.mxu0 %v3661_v36  ;;  %2005 = vmatpush1.bf16.msra.mxu1 %v3704_v46  ;;  %v3721_v36 = vld [vmem:[%s5275_s0 + $0x2a8] ss:$28 sps:$4 sm:$0xff]   ;;  %v3751_v46 = vld [vmem:[%s5275_s0 + $0x354] ss:$28 sps:$4 sm:$0xff]  }
  0x5a   :  { %1478 = vmatmul.mubr.bf16.gmra.mxu0 %v3627_v37  ;;  %2006 = vmatprep.subr.bf16.mxu1 %v3727_v59  ;;  %v3728_v37 = vld [vmem:[%s5275_s0 + $0x2dc] ss:$28 sps:$4 sm:$0xff]   ;;  %v3765_v59 = vld [vmem:[%s5275_s0 + $0x50] ss:$28 sps:$4 sm:$0xff]  }
  0x5b   :  { %1671 = vmatmul.mubr.bf16.gmra.mxu1 %v3628_v38  ;;  %1487 = vmatprep.mubr.bf16.mxu0 %v3632_v39  ;;  %v3730_v38 = vld [vmem:[%s5275_s0 + $0x2e4] ss:$28 sps:$4 sm:$0xff]   ;;  %v3732_v39 = vld [vmem:[%s5275_s0 + $0x2d8] ss:$28 sps:$4 sm:$0xff]  }
  0x5c   :  { %1680 = vmatprep.mubr.bf16.mxu1 %v3634_v40  ;;  %1814 = vmatpush1.bf16.msra.mxu0 %v3659_v41  ;;  %v3733_v40 = vld [vmem:[%s5275_s0 + $0x2e0] ss:$28 sps:$4 sm:$0xff]   ;;  %v3737_v41 = vld [vmem:[%s5275_s0 + $0x314] ss:$28 sps:$4 sm:$0xff]  }
  0x5d   :  { %1815 = vmatprep.subr.bf16.mxu0 %v3673_v42  ;;  %2007 = vmatpush1.bf16.msra.mxu1 %v3725_v58  ;;  %v3739_v42 = vld [vmem:[%s5275_s0 + $0x31c] ss:$28 sps:$4 sm:$0xff]   ;;  %v3764_v58 = vld [vmem:[%s5275_s0 + $0x48] ss:$28 sps:$4 sm:$0xff]  }
  0x5e   :  { %2008 = vmatprep.subr.bf16.mxu1 %v3748_v7  ;;  %v3842_v7 = vld [vmem:[%s5276_s3 + $0x14] ss:$8 sps:$4 sm:$0xff]  }
  0x60   :  { %1816 = vmatpush1.bf16.msra.mxu0 %v3671_v43  ;;  %v3741_v43 = vld [vmem:[%s5275_s0 + $0x310] ss:$28 sps:$4 sm:$0xff]  }
  0x61   :  { %1817 = vmatprep.subr.bf16.mxu0 %v3682_v45  ;;  %2009 = vmatpush1.bf16.msra.mxu1 %v3746_v8  ;;  %v3749_v45 = vld [vmem:[%s5275_s0 + $0x34c] ss:$28 sps:$4 sm:$0xff]   ;;  %v3772_v8 = vld [vmem:[%s5275_s0 + $0xb8] ss:$28 sps:$4 sm:$0xff]  }
  0x62   :  { %1488 = vmatmul.mubr.bf16.gmra.mxu0 %v3636_v44  ;;  %v3742_v44 = vld [vmem:[%s5275_s0 + $0x318] ss:$28 sps:$4 sm:$0xff]  }
  0x63   :  { %1681 = vmatmul.mubr.bf16.gmra.mxu1 %v3637_v48  ;;  %1497 = vmatprep.mubr.bf16.mxu0 %v3644_v49  ;;  %v3754_v48 = vld [vmem:[%s5275_s0 + $0x350] ss:$28 sps:$4 sm:$0xff]  }
  0x64   :  { %1690 = vmatprep.mubr.bf16.mxu1 %v3646_v50  ;;  %1818 = vmatpush2.bf16.msra.mxu0 %v3680_v51  ;;  %v3760_v49 = vld [vmem:[%s5275_s0 + $0x14] ss:$28 sps:$4 sm:$0xff]   ;;  %v3886_v50 = vmov 0  }
  0x65   :  { %1819 = vmatprep.subr.bf16.mxu0 %v3694_v52  ;;  %v3758_v51 = vld [vmem:[%s5275_s0 + $0x10] ss:$28 sps:$4 sm:$0xff]   ;;  %v3761_v52 = vld [vmem:[%s5275_s0 + $0x18] ss:$28 sps:$4 sm:$0xff]  }
  0x68   :  { %1820 = vmatpush2.bf16.msra.mxu0 %v3692_v55  ;;  %v3811_v55 = vld [vmem:[%s5276_s3 + $0x64] ss:$8 sps:$4 sm:$0xff]  }
  0x69   :  { %1821 = vmatprep.subr.bf16.mxu0 %v3703_v57  ;;  %v3818_v57 = vld [vmem:[%s5276_s3 + $0x54] ss:$8 sps:$4 sm:$0xff]  }
  0x6a   :  { %1498 = vmatmul.mubr.bf16.gmra.mxu0 %v3648_v53  ;;  %v3762_v53 = vld [vmem:[%s5275_s0 + $0x4c] ss:$28 sps:$4 sm:$0xff]  }
  0x6b   :  { %1691 = vmatmul.mubr.bf16.gmra.mxu1 %v3649_v54  ;;  %1507 = vmatprep.mubr.bf16.mxu0 %v3653_v56  ;;  %v3802_v54 = vld [vmem:[%s5276_s3 + $0x70] ss:$8 sps:$4 sm:$0xff]   ;;  %v3809_v56 = vld [vmem:[%s5276_s3 + $0x60] ss:$8 sps:$4 sm:$0xff]  }
  0x6c   :  { %1700 = vmatprep.mubr.bf16.mxu1 %v3655_v60  ;;  %1822 = vmatpush2.bf16.msra.mxu0 %v3701_v61  ;;  %v3766_v60 = vld [vmem:[%s5275_s0 + $0x84] ss:$28 sps:$4 sm:$0xff]   ;;  %v3816_v61 = vld [vmem:[%s5276_s3 + $0x50] ss:$8 sps:$4 sm:$0xff]  }
  0x6d   :  { %1823 = vmatprep.subr.bf16.mxu0 %v3715_v62  ;;  %v3825_v62 = vld [vmem:[%s5276_s3 + $0x44] ss:$8 sps:$4 sm:$0xff]  }
  0x70   :  { %1824 = vmatpush2.bf16.msra.mxu0 %v3713_v1  ;;  %v3768_v1 = vld [vmem:[%s5275_s0 + $0x80] ss:$28 sps:$4 sm:$0xff]  }
  0x71   :  { %1825 = vmatprep.subr.bf16.mxu0 %v3724_v3  ;;  %v3770_v3 = vld [vmem:[%s5275_s0 + $0xbc] ss:$28 sps:$4 sm:$0xff]  }
  0x72   :  { %1508 = vmatmul.mubr.bf16.gmra.mxu0 %v3657_v63  ;;  %v3823_v63 = vld [vmem:[%s5276_s3 + $0x40] ss:$8 sps:$4 sm:$0xff]  }
  0x73   :  { %1701 = vmatmul.mubr.bf16.gmra.mxu1 %v3658_v0  ;;  %1517 = vmatprep.mubr.bf16.mxu0 %v3665_v2  ;;  %v3832_v0 = vld [vmem:[%s5276_s3 + $0x34] ss:$8 sps:$4 sm:$0xff]   ;;  %v3769_v2 = vld [vmem:[%s5275_s0 + $0x88] ss:$28 sps:$4 sm:$0xff]  }
  0x74   :  { %1710 = vmatprep.mubr.bf16.mxu1 %v3667_v4  ;;  %1826 = vmatpush2.bf16.msra.mxu0 %v3722_v5  ;;  %v3830_v4 = vld [vmem:[%s5276_s3 + $0x30] ss:$8 sps:$4 sm:$0xff]   ;;  %v3839_v5 = vld [vmem:[%s5276_s3 + $0x24] ss:$8 sps:$4 sm:$0xff]  }
  0x75   :  { %1827 = vmatprep.subr.bf16.mxu0 %v3736_v6  ;;  %v3837_v6 = vld [vmem:[%s5276_s3 + $0x20] ss:$8 sps:$4 sm:$0xff]  }
  0x78   :  { %1828 = vmatpush2.bf16.msra.mxu0 %v3734_v9  ;;  %v3773_v9 = vld [vmem:[%s5275_s0 + $0xc0] ss:$28 sps:$4 sm:$0xff]  }
  0x79   :  { %1829 = vmatprep.subr.bf16.mxu0 %v3745_v11  ;;  %v3840_v11 = vld [vmem:[%s5276_s3 + $0x10] ss:$8 sps:$4 sm:$0xff]  }
  0x7a   :  { %1518 = vmatmul.mubr.bf16.gmra.mxu0 %v3669_v10  ;;  %v3774_v10 = vld [vmem:[%s5275_s0 + $0xf4] ss:$28 sps:$4 sm:$0xff]  }
  0x7b   :  { %1711 = vmatmul.mubr.bf16.gmra.mxu1 %v3670_v12  ;;  %1527 = vmatprep.mubr.bf16.mxu0 %v3674_v13  ;;  %v3845_v12 = vld [vmem:[%s5276_s3 + $0x4] ss:$8 sps:$4 sm:$0xff]   ;;  %v3843_v13 = vld [vmem:[%s5276_s3] ss:$8 sps:$4 sm:$0xff]  }
  0x7c   :  { %1720 = vmatprep.mubr.bf16.mxu1 %v3676_v14  ;;  %1830 = vmatpush2.bf16.msra.mxu0 %v3743_v15  ;;  %v3848_v14 = vld [vmem:[%s5276_s3 + $0xf4] ss:$8 sps:$4 sm:$0xff]   ;;  %v3776_v15 = vld [vmem:[%s5275_s0 + $0xf0] ss:$28 sps:$4 sm:$0xff]  }
  0x7d   :  { %1831 = vmatprep.subr.bf16.mxu0 %v3757_v16  ;;  %v3777_v16 = vld [vmem:[%s5275_s0 + $0xf8] ss:$28 sps:$4 sm:$0xff]  }
  0x80   :  { %1832 = vmatpush2.bf16.msra.mxu0 %v3755_v17  ;;  %v3778_v17 = vld [vmem:[%s5275_s0 + $0x12c] ss:$28 sps:$4 sm:$0xff]  }
  0x81   :  { %2487 = vmatprep.subr.bf16.mxu0 %v3804_v34  ;;  %v3788_v34 = vld [vmem:[%s5275_s0 + $0x198] ss:$28 sps:$4 sm:$0xff]  }
  0x82   :  { %1528 = vmatmul.mubr.bf16.gmra.mxu0 %v3678_v18  ;;  %v3846_v18 = vld [vmem:[%s5276_s3 + $0xf0] ss:$8 sps:$4 sm:$0xff]  }
  0x83   :  { %1721 = vmatmul.mubr.bf16.gmra.mxu1 %v3679_v19  ;;  %1537 = vmatprep.mubr.bf16.mxu0 %v3686_v20  ;;  %v3851_v19 = vld [vmem:[%s5276_s3 + $0xe4] ss:$8 sps:$4 sm:$0xff]   ;;  %v3849_v20 = vld [vmem:[%s5276_s3 + $0xe0] ss:$8 sps:$4 sm:$0xff]  }
  0x84   :  { %1730 = vmatprep.mubr.bf16.mxu1 %v3688_v21  ;;  %v3854_v21 = vld [vmem:[%s5276_s3 + $0xd4] ss:$8 sps:$4 sm:$0xff]  }
  0x8a   :  { %1538 = vmatmul.mubr.bf16.gmra.mxu0 %v3690_v22  ;;  %v3780_v22 = vld [vmem:[%s5275_s0 + $0x128] ss:$28 sps:$4 sm:$0xff]  }
  0x8b   :  { %1731 = vmatmul.mubr.bf16.gmra.mxu1 %v3691_v23  ;;  %1547 = vmatprep.mubr.bf16.mxu0 %v3695_v24  ;;  %v3781_v23 = vld [vmem:[%s5275_s0 + $0x130] ss:$28 sps:$4 sm:$0xff]   ;;  %v3782_v24 = vld [vmem:[%s5275_s0 + $0x164] ss:$28 sps:$4 sm:$0xff]  }
  0x8c   :  { %1740 = vmatprep.mubr.bf16.mxu1 %v3697_v25  ;;  %v3852_v25 = vld [vmem:[%s5276_s3 + $0xd0] ss:$8 sps:$4 sm:$0xff]  }
  0x92   :  { %1548 = vmatmul.mubr.bf16.gmra.mxu0 %v3699_v26  ;;  %v3855_v26 = vld [vmem:[%s5276_s3 + $0xc0] ss:$8 sps:$4 sm:$0xff]  }
  0x93   :  { %1741 = vmatmul.mubr.bf16.gmra.mxu1 %v3700_v27  ;;  %1557 = vmatprep.mubr.bf16.mxu0 %v3707_v28  ;;  %v3857_v27 = vld [vmem:[%s5276_s3 + $0xc4] ss:$8 sps:$4 sm:$0xff]   ;;  %v3784_v28 = vld [vmem:[%s5275_s0 + $0x160] ss:$28 sps:$4 sm:$0xff]  }
  0x94   :  { %1750 = vmatprep.mubr.bf16.mxu1 %v3709_v29  ;;  %v3785_v29 = vld [vmem:[%s5275_s0 + $0x168] ss:$28 sps:$4 sm:$0xff]  }
  0x9a   :  { %1558 = vmatmul.mubr.bf16.gmra.mxu0 %v3711_v30  ;;  %v3786_v30 = vld [vmem:[%s5275_s0 + $0x19c] ss:$28 sps:$4 sm:$0xff]  }
  0x9b   :  { %1751 = vmatmul.mubr.bf16.gmra.mxu1 %v3712_v31  ;;  %1567 = vmatprep.mubr.bf16.mxu0 %v3716_v32  ;;  %v269_v31 = vlaneseq  ;;  %v3858_v32 = vld [vmem:[%s5276_s3 + $0xb0] ss:$8 sps:$4 sm:$0xff]  }
  0x9c   :  { %1760 = vmatprep.mubr.bf16.mxu1 %v3718_v33  ;;  %v3860_v33 = vld [vmem:[%s5276_s3 + $0xb4] ss:$8 sps:$4 sm:$0xff]  }
  0xa2   :  { %1568 = vmatmul.mubr.bf16.gmra.mxu0 %v3720_v35  ;;  %v3789_v35 = vld [vmem:[%s5275_s0 + $0x1a0] ss:$28 sps:$4 sm:$0xff]  }
  0xa3   :  { %1761 = vmatmul.mubr.bf16.gmra.mxu1 %v3721_v36  ;;  %1577 = vmatprep.mubr.bf16.mxu0 %v3728_v37  ;;  %v3790_v36 = vld [vmem:[%s5275_s0 + $0x1d4] ss:$28 sps:$4 sm:$0xff]   ;;  %v4616_v37 = vshrl.u32 %v269_v31, 7 }
  0xa4   :  { %1770 = vmatprep.mubr.bf16.mxu1 %v3730_v38 }
  0xa5   :  { %5286 = vst [vmem:[#allocation2_spill] sm:$0xff] %v4616_v37  ;;  %v5282_v38 = vsub.s32 0, %v4616_v37 }
  0xaa   :  { %1578 = vmatmul.mubr.bf16.gmra.mxu0 %v3732_v39  ;;  %v267_v39 = vld [vmem:[%s5277_s2] sm:$0x3] }
  0xab   :  { %1771 = vmatmul.mubr.bf16.gmra.mxu1 %v3733_v40  ;;  %1587 = vmatprep.mubr.bf16.mxu0 %v3737_v41  ;;  %v5283_v40 = vsub.s32 1, %v4616_v37  ;;  %v3861_v41 = vld [vmem:[%s5276_s3 + $0xa0] ss:$8 sps:$4 sm:$0xff]  }
  0xac   :  { %1780 = vmatprep.mubr.bf16.mxu1 %v3739_v42  ;;  %v3863_v42 = vld [vmem:[%s5276_s3 + $0xa4] ss:$8 sps:$4 sm:$0xff]  }
  0xb2   :  { %1588 = vmatmul.mubr.bf16.gmra.mxu0 %v3741_v43  ;;  %v3792_v43 = vld [vmem:[%s5275_s0 + $0x1d0] ss:$28 sps:$4 sm:$0xff]  }
  0xb3   :  { %1781 = vmatmul.mubr.bf16.gmra.mxu1 %v3742_v44  ;;  %1597 = vmatprep.mubr.bf16.mxu0 %v3749_v45  ;;  %v3793_v44 = vld [vmem:[%s5275_s0 + $0x1d8] ss:$28 sps:$4 sm:$0xff]   ;;  %v4638_v45 = vrot.slane %v267_v39, %v5282_v38 }
  0xb4   :  { %1790 = vmatprep.mubr.bf16.mxu1 %v3751_v46  ;;  %v3794_v46 = vld [vmem:[%s5275_s0 + $0x20c] ss:$28 sps:$4 sm:$0xff]  }
  0xba   :  { %1598 = vmatmul.mubr.bf16.gmra.mxu0 %v3753_v47  ;;  %v4645_v47 = vrot.slane %v267_v39, %v5283_v40  ;;  %v3808_v39 = vld [vmem:[%s5275_s0 + $0x280] ss:$28 sps:$4 sm:$0xff]  }
  0xbb   :  { %1791 = vmatmul.mubr.bf16.gmra.mxu1 %v3754_v48  ;;  %1833 = vmatprep.mubr.bf16.mxu0 %v3760_v49 }
  0xbc   :  { %2026 = vmatprep.mubr.bf16.mxu1 %v3886_v50 }
  0xc2   :  { %1834 = vmatmul.mubr.bf16.vlgmr.msra.gmra.mxu0 %v3758_v51 }
  0xc3   :  { %2027 = vmatmul.mubr.bf16.vlgmr.msra.gmra.mxu1 %v3761_v52  ;;  %1843 = vmatprep.mubr.bf16.mxu0 %v3762_v53 }
  0xc4   :  { %2036 = vmatprep.mubr.bf16.mxu1 %v3886_v50  ;;  %2488 = vmatpush1.bf16.msra.mxu0 %v3802_v54 }
  0xc5   :  { %2489 = vmatprep.subr.bf16.mxu0 %v3811_v55 }
  0xc8   :  { %2490 = vmatpush1.bf16.msra.mxu0 %v3809_v56 }
  0xc9   :  { %2491 = vmatprep.subr.bf16.mxu0 %v3818_v57 }
  0xca   :  { %1844 = vmatmul.mubr.bf16.gmra.mxu0 %v3764_v58  ;;  %v3796_v58 = vld [vmem:[%s5275_s0 + $0x208] ss:$28 sps:$4 sm:$0xff]  }
  0xcb   :  { %2037 = vmatmul.mubr.bf16.gmra.mxu1 %v3765_v59  ;;  %1853 = vmatprep.mubr.bf16.mxu0 %v3766_v60  ;;  %v3797_v59 = vld [vmem:[%s5275_s0 + $0x210] ss:$28 sps:$4 sm:$0xff]  }
  0xcc   :  { %2046 = vmatprep.mubr.bf16.mxu1 %v3886_v50  ;;  %2492 = vmatpush1.bf16.msra.mxu0 %v3816_v61 }
  0xcd   :  { %2493 = vmatprep.subr.bf16.mxu0 %v3825_v62  ;;  %v3798_v62 = vld [vmem:[%s5275_s0 + $0x244] ss:$28 sps:$4 sm:$0xff]  }
  0xd0   :  { %2494 = vmatpush1.bf16.msra.mxu0 %v3823_v63  ;;  %v3866_v63 = vld [vmem:[%s5276_s3 + $0x94] ss:$8 sps:$4 sm:$0xff]  }
  0xd1   :  { %2495 = vmatprep.subr.bf16.mxu0 %v3832_v0 }
  0xd2   :  { %1854 = vmatmul.mubr.bf16.gmra.mxu0 %v3768_v1 }
  0xd3   :  { %2047 = vmatmul.mubr.bf16.gmra.mxu1 %v3769_v2  ;;  %1863 = vmatprep.mubr.bf16.mxu0 %v3770_v3  ;;  %v3864_v2 = vld [vmem:[%s5276_s3 + $0x90] ss:$8 sps:$4 sm:$0xff]  }
  0xd4   :  { %2056 = vmatprep.mubr.bf16.mxu1 %v3886_v50  ;;  %2496 = vmatpush1.bf16.msra.mxu0 %v3830_v4 }
  0xd5   :  { %2497 = vmatprep.subr.bf16.mxu0 %v3839_v5 }
  0xd8   :  { %2498 = vmatpush1.bf16.msra.mxu0 %v3837_v6 }
  0xd9   :  { %2499 = vmatprep.subr.bf16.mxu0 %v3842_v7 }
  0xda   :  { %1864 = vmatmul.mubr.bf16.gmra.mxu0 %v3772_v8 }
  0xdb   :  { %2057 = vmatmul.mubr.bf16.gmra.mxu1 %v3773_v9  ;;  %1873 = vmatprep.mubr.bf16.mxu0 %v3774_v10 }
  0xdc   :  { %2066 = vmatprep.mubr.bf16.mxu1 %v3886_v50  ;;  %2500 = vmatpush1.bf16.msra.mxu0 %v3840_v11  ;;  %v3869_v11 = vld [vmem:[%s5276_s3 + $0x84] ss:$8 sps:$4 sm:$0xff]  }
  0xdd   :  { %2501 = vmatprep.subr.bf16.mxu0 %v3845_v12 }
  0xe0   :  { %2502 = vmatpush1.bf16.msra.mxu0 %v3843_v13 }
  0xe1   :  { %2503 = vmatprep.subr.bf16.mxu0 %v3848_v14  ;;  %v3867_v14 = vld [vmem:[%s5276_s3 + $0x80] ss:$8 sps:$4 sm:$0xff]  }
  0xe2   :  { %1874 = vmatmul.mubr.bf16.gmra.mxu0 %v3776_v15 }
  0xe3   :  { %2067 = vmatmul.mubr.bf16.gmra.mxu1 %v3777_v16  ;;  %1883 = vmatprep.mubr.bf16.mxu0 %v3778_v17  ;;  %v3800_v17 = vld [vmem:[%s5275_s0 + $0x240] ss:$28 sps:$4 sm:$0xff]  }
  0xe4   :  { %2076 = vmatprep.mubr.bf16.mxu1 %v3886_v50  ;;  %2504 = vmatpush2.bf16.msra.mxu0 %v3846_v18  ;;  %v3801_v18 = vld [vmem:[%s5275_s0 + $0x248] ss:$28 sps:$4 sm:$0xff]  }
  0xe5   :  { %2505 = vmatprep.subr.bf16.mxu0 %v3851_v19 }
  0xe8   :  { %2506 = vmatpush2.bf16.msra.mxu0 %v3849_v20 }
  0xe9   :  { %2507 = vmatprep.subr.bf16.mxu0 %v3854_v21  ;;  %v3805_v21 = vld [vmem:[%s5275_s0 + $0x27c] ss:$28 sps:$4 sm:$0xff]  }
  0xea   :  { %1884 = vmatmul.mubr.bf16.gmra.mxu0 %v3780_v22 }
  0xeb   :  { %2077 = vmatmul.mubr.bf16.gmra.mxu1 %v3781_v23  ;;  %1893 = vmatprep.mubr.bf16.mxu0 %v3782_v24 }
  0xec   :  { %2086 = vmatprep.mubr.bf16.mxu1 %v3886_v50  ;;  %2508 = vmatpush2.bf16.msra.mxu0 %v3852_v25 }
  0xed   :  { %2509 = vmatprep.subr.bf16.mxu0 %v3857_v27 }
  0xf0   :  { %2510 = vmatpush2.bf16.msra.mxu0 %v3855_v26 }
  0xf1   :  { %2511 = vmatprep.subr.bf16.mxu0 %v3860_v33 }
  0xf2   :  { %1894 = vmatmul.mubr.bf16.gmra.mxu0 %v3784_v28 }
  0xf3   :  { %2087 = vmatmul.mubr.bf16.gmra.mxu1 %v3785_v29  ;;  %1903 = vmatprep.mubr.bf16.mxu0 %v3786_v30 }
  0xf4   :  { %2096 = vmatprep.mubr.bf16.mxu1 %v3886_v50  ;;  %2512 = vmatpush2.bf16.msra.mxu0 %v3858_v32 }
  0xf5   :  { %2513 = vmatprep.subr.bf16.mxu0 %v3863_v42 }
  0xf8   :  { %2514 = vmatpush2.bf16.msra.mxu0 %v3861_v41 }
  0xf9   :  { %2515 = vmatprep.subr.bf16.mxu0 %v3866_v63  ;;  %v3812_v63 = vld [vmem:[%s5275_s0 + $0x2b0] ss:$28 sps:$4 sm:$0xff]  }
  0xfa   :  { %1904 = vmatmul.mubr.bf16.gmra.mxu0 %v3788_v34 }
  0xfb   :  { %2097 = vmatmul.mubr.bf16.gmra.mxu1 %v3789_v35  ;;  %1913 = vmatprep.mubr.bf16.mxu0 %v3790_v36  ;;  %v3807_v36 = vld [vmem:[%s5275_s0 + $0x278] ss:$28 sps:$4 sm:$0xff]  }
  0xfc   :  { %2106 = vmatprep.mubr.bf16.mxu1 %v3886_v50  ;;  %2516 = vmatpush2.bf16.msra.mxu0 %v3864_v2 }
  0xfd   :  { %2517 = vmatprep.subr.bf16.mxu0 %v3869_v11 }
 0x100   :  { %2518 = vmatpush2.bf16.msra.mxu0 %v3867_v14 }
 0x102   :  { %v1449_v48 = vpop.f32.mrf.mxu0  ;;  %1914 = vmatmul.mubr.bf16.gmra.mxu0 %v3792_v43  ;;  %v3814_v43 = vld [vmem:[%s5275_s0 + $0x2b4] ss:$28 sps:$4 sm:$0xff]  }
 0x103   :  { %v1642_v49 = vpop.f32.mrf.mxu1  ;;  %2107 = vmatmul.mubr.bf16.gmra.mxu1 %v3793_v44  ;;  %v1450_v51 = vadd.f32 %v1449_v48, %v4638_v45  ;;  %1923 = vmatprep.mubr.bf16.mxu0 %v3794_v46 }
 0x104   :  { %2116 = vmatprep.mubr.bf16.mxu1 %v3886_v50  ;;  %v1451_v52 = vpop.f32.mrf.mxu0 }
 0x105   :  { %v1644_v53 = vpop.f32.mrf.mxu1  ;;  %v4649_v54 = vadd.f32 %v1642_v49, %v1450_v51  ;;  %v1452_v55 = vadd.f32 %v1451_v52, %v4645_v47 }
 0x106   :  { %v1453_v56 = vpop.f32.mrf.mxu0 }
 0x107   :  { %v1646_v57 = vpop.f32.mrf.mxu1  ;;  %v4658_v60 = vadd.f32 %v1644_v53, %v1452_v55  ;;  %v1454_v61 = vadd.f32 %v1453_v56, %v4638_v45 }
 0x108   :  { %v1455_v0 = vpop.f32.mrf.mxu0 }
 0x109   :  { %v1648_v1 = vpop.f32.mrf.mxu1  ;;  %v4670_v3 = vadd.f32 %v1646_v57, %v1454_v61  ;;  %v1456_v4 = vadd.f32 %v1455_v0, %v4645_v47  ;;  %v3815_v0 = vld [vmem:[%s5275_s0 + $0x2b8] ss:$28 sps:$4 sm:$0xff]  }
 0x10a   :  { %v1459_v5 = vpop.f32.mrf.mxu0  ;;  %1924 = vmatmul.mubr.bf16.gmra.mxu0 %v3796_v58 }
 0x10b   :  { %v1652_v6 = vpop.f32.mrf.mxu1  ;;  %2117 = vmatmul.mubr.bf16.gmra.mxu1 %v3797_v59  ;;  %v4673_v7 = vadd.f32 %v1648_v1, %v1456_v4  ;;  %v1460_v8 = vadd.f32 %v1459_v5, %v4638_v45  ;;  %1933 = vmatprep.mubr.bf16.mxu0 %v3798_v62  ;;  %v3821_v4 = vld [vmem:[%s5275_s0 + $0x2ec] ss:$28 sps:$4 sm:$0xff]  }
 0x10c   :  { %2126 = vmatprep.mubr.bf16.mxu1 %v3886_v50  ;;  %v1461_v9 = vpop.f32.mrf.mxu0 }
 0x10d   :  { %v1654_v10 = vpop.f32.mrf.mxu1  ;;  %v4680_v12 = vadd.f32 %v1652_v6, %v1460_v8  ;;  %v1462_v13 = vadd.f32 %v1461_v9, %v4645_v47 }
 0x10e   :  { %v1463_v15 = vpop.f32.mrf.mxu0 }
 0x10f   :  { %v1656_v16 = vpop.f32.mrf.mxu1  ;;  %v4692_v19 = vadd.f32 %v1654_v10, %v1462_v13  ;;  %v1464_v20 = vadd.f32 %v1463_v15, %v4638_v45 }
 0x110   :  { %v1465_v22 = vpop.f32.mrf.mxu0 }
 0x111   :  { %v1658_v23 = vpop.f32.mrf.mxu1  ;;  %v4698_v24 = vadd.f32 %v1656_v16, %v1464_v20  ;;  %v1466_v25 = vadd.f32 %v1465_v22, %v4645_v47  ;;  %v3819_v22 = vld [vmem:[%s5275_s0 + $0x2e8] ss:$28 sps:$4 sm:$0xff]  }
 0x112   :  { %v1469_v26 = vpop.f32.mrf.mxu0  ;;  %1934 = vmatmul.mubr.bf16.gmra.mxu0 %v3800_v17 }
 0x113   :  { %v1662_v27 = vpop.f32.mrf.mxu1  ;;  %2127 = vmatmul.mubr.bf16.gmra.mxu1 %v3801_v18  ;;  %v4701_v28 = vadd.f32 %v1658_v23, %v1466_v25  ;;  %v1470_v29 = vadd.f32 %v1469_v26, %v4638_v45  ;;  %1943 = vmatprep.mubr.bf16.mxu0 %v3805_v21  ;;  %v3822_v23 = vld [vmem:[%s5275_s0 + $0x2f0] ss:$28 sps:$4 sm:$0xff]  }
 0x114   :  { %2136 = vmatprep.mubr.bf16.mxu1 %v3886_v50  ;;  %v1471_v30 = vpop.f32.mrf.mxu0 }
 0x115   :  { %v1664_v31 = vpop.f32.mrf.mxu1  ;;  %v4705_v32 = vadd.f32 %v1662_v27, %v1470_v29  ;;  %v1472_v33 = vadd.f32 %v1471_v30, %v4645_v47  ;;  %v3828_v27 = vld [vmem:[%s5275_s0 + $0x324] ss:$28 sps:$4 sm:$0xff]  }
 0x116   :  { %v1473_v34 = vpop.f32.mrf.mxu0 }
 0x117   :  { %v1666_v35 = vpop.f32.mrf.mxu1  ;;  %v4714_v41 = vadd.f32 %v1664_v31, %v1472_v33  ;;  %v1474_v42 = vadd.f32 %v1473_v34, %v4638_v45 }
 0x118   :  { %v1475_v44 = vpop.f32.mrf.mxu0 }
 0x119   :  { %v1668_v46 = vpop.f32.mrf.mxu1  ;;  %v4720_v48 = vadd.f32 %v1666_v35, %v1474_v42  ;;  %v1476_v49 = vadd.f32 %v1475_v44, %v4645_v47 }
 0x11a   :  { %v1479_v51 = vpop.f32.mrf.mxu0  ;;  %1944 = vmatmul.mubr.bf16.gmra.mxu0 %v3807_v36 }
 0x11b   :  { %v1672_v52 = vpop.f32.mrf.mxu1  ;;  %2137 = vmatmul.mubr.bf16.gmra.mxu1 %v3808_v39  ;;  %v4723_v53 = vadd.f32 %v1668_v46, %v1476_v49  ;;  %v1480_v55 = vadd.f32 %v1479_v51, %v4638_v45  ;;  %1953 = vmatprep.mubr.bf16.mxu0 %v3814_v43  ;;  %v3826_v49 = vld [vmem:[%s5275_s0 + $0x320] ss:$28 sps:$4 sm:$0xff]   ;;  %v3829_v51 = vld [vmem:[%s5275_s0 + $0x328] ss:$28 sps:$4 sm:$0xff]  }
 0x11c   :  { %2146 = vmatprep.mubr.bf16.mxu1 %v3886_v50  ;;  %v1481_v56 = vpop.f32.mrf.mxu0 }
 0x11d   :  { %v1674_v57 = vpop.f32.mrf.mxu1  ;;  %v4727_v58 = vadd.f32 %v1672_v52, %v1480_v55  ;;  %v1482_v59 = vadd.f32 %v1481_v56, %v4645_v47  ;;  %v3835_v56 = vld [vmem:[%s5275_s0 + $0x35c] ss:$28 sps:$4 sm:$0xff]  }
 0x11e   :  { %v1483_v61 = vpop.f32.mrf.mxu0 }
 0x11f   :  { %v1676_v62 = vpop.f32.mrf.mxu1  ;;  %v4736_v1 = vadd.f32 %v1674_v57, %v1482_v59  ;;  %v1484_v2 = vadd.f32 %v1483_v61, %v4638_v45 }
 0x120   :  { %v1485_v5 = vpop.f32.mrf.mxu0 }
 0x121   :  { %v1678_v6 = vpop.f32.mrf.mxu1  ;;  %v4742_v8 = vadd.f32 %v1676_v62, %v1484_v2  ;;  %v1486_v9 = vadd.f32 %v1485_v5, %v4645_v47 }
 0x122   :  { %v1489_v10 = vpop.f32.mrf.mxu0  ;;  %1954 = vmatmul.mubr.bf16.gmra.mxu0 %v3812_v63 }
 0x123   :  { %v1682_v11 = vpop.f32.mrf.mxu1  ;;  %2147 = vmatmul.mubr.bf16.gmra.mxu1 %v3815_v0  ;;  %v4745_v13 = vadd.f32 %v1678_v6, %v1486_v9  ;;  %v1490_v14 = vadd.f32 %v1489_v10, %v4638_v45  ;;  %1963 = vmatprep.mubr.bf16.mxu0 %v3821_v4 }
 0x124   :  { %2156 = vmatprep.mubr.bf16.mxu1 %v3886_v50  ;;  %v1491_v15 = vpop.f32.mrf.mxu0 }
 0x125   :  { %v1684_v16 = vpop.f32.mrf.mxu1  ;;  %v4749_v17 = vadd.f32 %v1682_v11, %v1490_v14  ;;  %v1492_v18 = vadd.f32 %v1491_v15, %v4645_v47  ;;  %v3833_v11 = vld [vmem:[%s5275_s0 + $0x358] ss:$28 sps:$4 sm:$0xff]   ;;  %v3836_v14 = vld [vmem:[%s5275_s0 + $0x360] ss:$28 sps:$4 sm:$0xff]  }
 0x126   :  { %v1493_v20 = vpop.f32.mrf.mxu0 }
 0x127   :  { %v1686_v21 = vpop.f32.mrf.mxu1  ;;  %v4758_v25 = vadd.f32 %v1684_v16, %v1492_v18  ;;  %v1494_v26 = vadd.f32 %v1493_v20, %v4638_v45 }
 0x128   :  { %v4764_v29 = vpop.f32.mrf.mxu0 }
 0x129   :  { %v4766_v30 = vpop.f32.mrf.mxu1  ;;  %v4768_v31 = vadd.f32 %v1686_v21, %v1494_v26 }
 0x12a   :  { %v1499_v33 = vpop.f32.mrf.mxu0  ;;  %1964 = vmatmul.mubr.bf16.gmra.mxu0 %v3819_v22 }
 0x12b   :  { %v1692_v34 = vpop.f32.mrf.mxu1  ;;  %2157 = vmatmul.mubr.bf16.gmra.mxu1 %v3822_v23  ;;  %v1500_v35 = vadd.f32 %v1499_v33, %v4638_v45  ;;  %1973 = vmatprep.mubr.bf16.mxu0 %v3828_v27 }
 0x12c   :  { %2166 = vmatprep.mubr.bf16.mxu1 %v3886_v50  ;;  %v1501_v36 = vpop.f32.mrf.mxu0 }
 0x12d   :  { %v1694_v39 = vpop.f32.mrf.mxu1  ;;  %v4772_v42 = vadd.f32 %v1692_v34, %v1500_v35  ;;  %v1502_v43 = vadd.f32 %v1501_v36, %v4645_v47 }
 0x12e   :  { %v1503_v44 = vpop.f32.mrf.mxu0 }
 0x12f   :  { %v1696_v46 = vpop.f32.mrf.mxu1  ;;  %v4781_v52 = vadd.f32 %v1694_v39, %v1502_v43  ;;  %v1504_v55 = vadd.f32 %v1503_v44, %v4638_v45 }
 0x130   :  { %v4787_v57 = vpop.f32.mrf.mxu0 }
 0x131   :  { %v4789_v59 = vpop.f32.mrf.mxu1  ;;  %v4791_v61 = vadd.f32 %v1696_v46, %v1504_v55 }
 0x132   :  { %v1509_v62 = vpop.f32.mrf.mxu0  ;;  %1974 = vmatmul.mubr.bf16.gmra.mxu0 %v3826_v49 }
 0x133   :  { %v1702_v63 = vpop.f32.mrf.mxu1  ;;  %2167 = vmatmul.mubr.bf16.gmra.mxu1 %v3829_v51  ;;  %v1510_v0 = vadd.f32 %v1509_v62, %v4638_v45  ;;  %1983 = vmatprep.mubr.bf16.mxu0 %v3835_v56 }
 0x134   :  { %2176 = vmatprep.mubr.bf16.mxu1 %v3886_v50  ;;  %v1511_v2 = vpop.f32.mrf.mxu0 }
 0x135   :  { %v1704_v4 = vpop.f32.mrf.mxu1  ;;  %v4795_v5 = vadd.f32 %v1702_v63, %v1510_v0  ;;  %v1512_v6 = vadd.f32 %v1511_v2, %v4645_v47 }
 0x136   :  { %v1513_v9 = vpop.f32.mrf.mxu0 }
 0x137   :  { %v1706_v10 = vpop.f32.mrf.mxu1  ;;  %v4804_v15 = vadd.f32 %v1704_v4, %v1512_v6  ;;  %v1514_v50 = vadd.f32 %v1513_v9, %v4638_v45 }
 0x138   :  { %v4807_v16 = vpop.f32.mrf.mxu0 }
 0x139   :  { %v4809_v18 = vpop.f32.mrf.mxu1  ;;  %v4811_v20 = vadd.f32 %v1706_v10, %v1514_v50 }
 0x13a   :  { %v1519_v21 = vpop.f32.mrf.mxu0  ;;  %1984 = vmatmul.mubr.bf16.gmra.mxu0 %v3833_v11 }
 0x13b   :  { %v1712_v22 = vpop.f32.mrf.mxu1  ;;  %2177 = vmatmul.mubr.bf16.gmra.mxu1 %v3836_v14  ;;  %v1520_v23 = vadd.f32 %v1519_v21, %v4638_v45 }
 0x13c   :  { %v1521_v26 = vpop.f32.mrf.mxu0 }
 0x13d   :  { %v1714_v27 = vpop.f32.mrf.mxu1  ;;  %v4814_v33 = vadd.f32 %v1712_v22, %v1520_v23  ;;  %v1522_v34 = vadd.f32 %v1521_v26, %v4645_v47 }
 0x13e   :  { %v1523_v35 = vpop.f32.mrf.mxu0 }
 0x13f   :  { %v1716_v36 = vpop.f32.mrf.mxu1  ;;  %v4817_v39 = vadd.f32 %v1714_v27, %v1522_v34  ;;  %v1524_v43 = vadd.f32 %v1523_v35, %v4638_v45 }
 0x140   :  { %v4820_v44 = vpop.f32.mrf.mxu0 }
 0x141   :  { %v4822_v46 = vpop.f32.mrf.mxu1  ;;  %v4824_v49 = vadd.f32 %v1716_v36, %v1524_v43 }
 0x142   :  { %v1529_v51 = vpop.f32.mrf.mxu0 }
 0x143   :  { %v1722_v55 = vpop.f32.mrf.mxu1  ;;  %v1530_v56 = vadd.f32 %v1529_v51, %v4638_v45 }
 0x144   :  { %v1531_v62 = vpop.f32.mrf.mxu0 }
 0x145   :  { %v1724_v63 = vpop.f32.mrf.mxu1  ;;  %v4827_v0 = vadd.f32 %v1722_v55, %v1530_v56  ;;  %v1532_v2 = vadd.f32 %v1531_v62, %v4645_v47 }
 0x146   :  { %v1533_v4 = vpop.f32.mrf.mxu0 }
 0x147   :  { %v1726_v6 = vpop.f32.mrf.mxu1  ;;  %v4830_v9 = vadd.f32 %v1724_v63, %v1532_v2  ;;  %v1534_v10 = vadd.f32 %v1533_v4, %v4638_v45 }
 0x148   :  { %v4833_v11 = vpop.f32.mrf.mxu0 }
 0x149   :  { %v4835_v14 = vpop.f32.mrf.mxu1  ;;  %v4837_v50 = vadd.f32 %v1726_v6, %v1534_v10 }
 0x14a   :  { %v1539_v21 = vpop.f32.mrf.mxu0 }
 0x14b   :  { %v1732_v22 = vpop.f32.mrf.mxu1  ;;  %v1540_v23 = vadd.f32 %v1539_v21, %v4638_v45 }
 0x14c   :  { %v1541_v26 = vpop.f32.mrf.mxu0 }
 0x14d   :  { %v1734_v27 = vpop.f32.mrf.mxu1  ;;  %v4840_v34 = vadd.f32 %v1732_v22, %v1540_v23  ;;  %v1542_v35 = vadd.f32 %v1541_v26, %v4645_v47 }
 0x14e   :  { %v1543_v36 = vpop.f32.mrf.mxu0 }
 0x14f   :  { %v1736_v43 = vpop.f32.mrf.mxu1  ;;  %v4843_v51 = vadd.f32 %v1734_v27, %v1542_v35  ;;  %v1544_v55 = vadd.f32 %v1543_v36, %v4638_v45 }
 0x150   :  { %v4846_v56 = vpop.f32.mrf.mxu0 }
 0x151   :  { %v4848_v62 = vpop.f32.mrf.mxu1  ;;  %v4850_v63 = vadd.f32 %v1736_v43, %v1544_v55 }
 0x152   :  { %v1549_v2 = vpop.f32.mrf.mxu0 }
 0x153   :  { %5287 = vst [vmem:[#allocation3_spill] sm:$0xff] %v4850_v63  ;;  %v1742_v4 = vpop.f32.mrf.mxu1  ;;  %v1550_v6 = vadd.f32 %v1549_v2, %v4638_v45 }
 0x154   :  { %v1551_v10 = vpop.f32.mrf.mxu0 }
 0x155   :  { %v1744_v21 = vpop.f32.mrf.mxu1  ;;  %v4853_v22 = vadd.f32 %v1742_v4, %v1550_v6  ;;  %v1552_v23 = vadd.f32 %v1551_v10, %v4645_v47 }
 0x156   :  { %v1553_v26 = vpop.f32.mrf.mxu0 }
 0x157   :  { %5288 = vst [vmem:[#allocation4_spill] sm:$0xff] %v4853_v22  ;;  %v1746_v27 = vpop.f32.mrf.mxu1  ;;  %v4856_v35 = vadd.f32 %v1744_v21, %v1552_v23  ;;  %v1554_v36 = vadd.f32 %v1553_v26, %v4638_v45 }
 0x158   :  { %v4859_v38 = vpop.f32.mrf.mxu0 }
 0x159   :  { %5289 = vst [vmem:[#allocation5_spill] sm:$0xff] %v4856_v35  ;;  %5290 = vst [vmem:[#allocation6_spill] sm:$0xff] %v4859_v38  ;;  %v4861_v43 = vpop.f32.mrf.mxu1  ;;  %v4863_v55 = vadd.f32 %v1746_v27, %v1554_v36 }
 0x15a   :  { %5291 = vst [vmem:[#allocation7_spill] sm:$0xff] %v4861_v43  ;;  %v1559_v40 = vpop.f32.mrf.mxu0 }
 0x15b   :  { %5292 = vst [vmem:[#allocation8_spill] sm:$0xff] %v4863_v55  ;;  %v1752_v2 = vpop.f32.mrf.mxu1  ;;  %v1560_v37 = vadd.f32 %v1559_v40, %v4638_v45 }
 0x15c   :  { %v1561_v4 = vpop.f32.mrf.mxu0 }
 0x15d   :  { %v1754_v6 = vpop.f32.mrf.mxu1  ;;  %v4866_v22 = vadd.f32 %v1752_v2, %v1560_v37  ;;  %v1562_v10 = vadd.f32 %v1561_v4, %v4645_v47 }
 0x15e   :  { %v1563_v21 = vpop.f32.mrf.mxu0 }
 0x15f   :  { %5293 = vst [vmem:[#allocation9_spill] sm:$0xff] %v4866_v22  ;;  %v1756_v23 = vpop.f32.mrf.mxu1  ;;  %v4869_v35 = vadd.f32 %v1754_v6, %v1562_v10  ;;  %v1564_v26 = vadd.f32 %v1563_v21, %v4638_v45 }
 0x160   :  { %v4872_v38 = vpop.f32.mrf.mxu0 }
 0x161   :  { %5294 = vst [vmem:[#allocation10_spill] sm:$0xff] %v4869_v35  ;;  %5295 = vst [vmem:[#allocation11_spill] sm:$0xff] %v4872_v38  ;;  %v4874_v27 = vpop.f32.mrf.mxu1  ;;  %v4876_v36 = vadd.f32 %v1756_v23, %v1564_v26 }
 0x162   :  { %5296 = vst [vmem:[#allocation12_spill] sm:$0xff] %v4874_v27  ;;  %v1569_v55 = vpop.f32.mrf.mxu0 }
 0x163   :  { %5297 = vst [vmem:[#allocation13_spill] sm:$0xff] %v4876_v36  ;;  %v1762_v40 = vpop.f32.mrf.mxu1  ;;  %v1570_v43 = vadd.f32 %v1569_v55, %v4638_v45  ;;  %v3870_v55 = vld [vmem:[%s5278_s5 + $0x78] sm:$0xff]  }
 0x164   :  { %v1571_v37 = vpop.f32.mrf.mxu0  ;;  %3381 = vmatprep.subr.bf16.mxu1 %v3870_v55 }
 0x165   :  { %v1764_v2 = vpop.f32.mrf.mxu1  ;;  %v4879_v22 = vadd.f32 %v1762_v40, %v1570_v43  ;;  %v1572_v4 = vadd.f32 %v1571_v37, %v4645_v47  ;;  %v3871_v43 = vld [vmem:[%s5278_s5 + $0x38] sm:$0xff]  }
 0x166   :  { %v1573_v6 = vpop.f32.mrf.mxu0  ;;  %3382 = vmatpush3.bf16.msra.mxu1 %v3871_v43 }
 0x167   :  { %5298 = vst [vmem:[#allocation14_spill] sm:$0xff] %v4879_v22  ;;  %v1766_v10 = vpop.f32.mrf.mxu1  ;;  %v4882_v35 = vadd.f32 %v1764_v2, %v1572_v4  ;;  %v1574_v21 = vadd.f32 %v1573_v6, %v4638_v45 }
 0x168   :  { %v4885_v38 = vpop.f32.mrf.mxu0 }
 0x169   :  { %5299 = vst [vmem:[#allocation15_spill] sm:$0xff] %v4882_v35  ;;  %5300 = vst [vmem:[#allocation16_spill] sm:$0xff] %v4885_v38  ;;  %v4887_v23 = vpop.f32.mrf.mxu1  ;;  %v4892_v26 = vadd.f32 %v1766_v10, %v1574_v21 }
 0x16a   :  { %5301 = vst [vmem:[#allocation17_spill] sm:$0xff] %v4887_v23  ;;  %v1579_v40 = vpop.f32.mrf.mxu0 }
 0x16b   :  { %5302 = vst [vmem:[#allocation18_spill] sm:$0xff] %v4892_v26  ;;  %v1772_v37 = vpop.f32.mrf.mxu1  ;;  %v1580_v2 = vadd.f32 %v1579_v40, %v4638_v45 }
 0x16c   :  { %v1581_v4 = vpop.f32.mrf.mxu0 }
 0x16d   :  { %v1774_v6 = vpop.f32.mrf.mxu1  ;;  %v4898_v35 = vadd.f32 %v1772_v37, %v1580_v2  ;;  %v1582_v23 = vadd.f32 %v1581_v4, %v4645_v47 }
 0x16e   :  { %v1583_v22 = vpop.f32.mrf.mxu0 }
 0x16f   :  { %5303 = vst [vmem:[#allocation19_spill] sm:$0xff] %v4898_v35  ;;  %v1776_v38 = vpop.f32.mrf.mxu1  ;;  %v4901_v10 = vadd.f32 %v1774_v6, %v1582_v23  ;;  %v1584_v21 = vadd.f32 %v1583_v22, %v4638_v45 }
 0x170   :  { %v4904_v26 = vpop.f32.mrf.mxu0 }
 0x171   :  { %5304 = vst [vmem:[#allocation20_spill] sm:$0xff] %v4901_v10  ;;  %5305 = vst [vmem:[#allocation21_spill] sm:$0xff] %v4904_v26  ;;  %v4906_v36 = vpop.f32.mrf.mxu1  ;;  %v4908_v55 = vadd.f32 %v1776_v38, %v1584_v21  ;;  %v3872_v38 = vld [vmem:[%s5278_s5 + $0x70] sm:$0xff]  }
 0x172   :  { %5306 = vst [vmem:[#allocation22_spill] sm:$0xff] %v4906_v36  ;;  %v1589_v40 = vpop.f32.mrf.mxu0  ;;  %v3873_v21 = vld [vmem:[%s5278_s5 + $0x30] sm:$0xff]   ;;  %3383 = vmatprep.subr.bf16.mxu1 %v3872_v38 }
 0x173   :  { %5307 = vst [vmem:[#allocation23_spill] sm:$0xff] %v4908_v55  ;;  %v1782_v43 = vpop.f32.mrf.mxu1  ;;  %v1590_v27 = vadd.f32 %v1589_v40, %v4638_v45  ;;  %3384 = vmatpush3.bf16.msra.mxu1 %v3873_v21 }
 0x174   :  { %v1591_v37 = vpop.f32.mrf.mxu0 }
 0x175   :  { %v1784_v2 = vpop.f32.mrf.mxu1  ;;  %v4911_v35 = vadd.f32 %v1782_v43, %v1590_v27  ;;  %v1592_v4 = vadd.f32 %v1591_v37, %v4645_v47 }
 0x176   :  { %v1593_v23 = vpop.f32.mrf.mxu0 }
 0x177   :  { %5308 = vst [vmem:[#allocation24_spill] sm:$0xff] %v4911_v35  ;;  %v1786_v6 = vpop.f32.mrf.mxu1  ;;  %v4914_v10 = vadd.f32 %v1784_v2, %v1592_v4  ;;  %v1594_v22 = vadd.f32 %v1593_v23, %v4638_v45 }
 0x178   :  { %v4923_v40 = vpop.f32.mrf.mxu0 }
 0x179   :  { %5309 = vst [vmem:[#allocation25_spill] sm:$0xff] %v4914_v10  ;;  %5310 = vst [vmem:[#allocation26_spill] sm:$0xff] %v4923_v40  ;;  %v4925_v27 = vpop.f32.mrf.mxu1  ;;  %v4927_v43 = vadd.f32 %v1786_v6, %v1594_v22 }
 0x17a   :  { %5311 = vst [vmem:[#allocation27_spill] sm:$0xff] %v4925_v27  ;;  %v1599_v37 = vpop.f32.mrf.mxu0 }
 0x17b   :  { %5312 = vst [vmem:[#allocation28_spill] sm:$0xff] %v4927_v43  ;;  %v1792_v2 = vpop.f32.mrf.mxu1  ;;  %v1600_v4 = vadd.f32 %v1599_v37, %v4638_v45 }
 0x17c   :  { %v1601_v23 = vpop.f32.mrf.mxu0 }
 0x17d   :  { %v1794_v10 = vpop.f32.mrf.mxu1  ;;  %v4930_v35 = vadd.f32 %v1792_v2, %v1600_v4  ;;  %v1602_v55 = vadd.f32 %v1601_v23, %v4645_v47 }
 0x17e   :  { %v1603_v36 = vpop.f32.mrf.mxu0 }
 0x17f   :  { %5313 = vst [vmem:[#allocation29_spill] sm:$0xff] %v4930_v35  ;;  %v1796_v26 = vpop.f32.mrf.mxu1  ;;  %v4933_v63 = vadd.f32 %v1794_v10, %v1602_v55  ;;  %v1604_v27 = vadd.f32 %v1603_v36, %v4638_v45  ;;  %v3874_v45 = vld [vmem:[%s5278_s5 + $0x68] sm:$0xff]  }
 0x180   :  { %v4936_v6 = vpop.f32.mrf.mxu0  ;;  %v3875_v36 = vld [vmem:[%s5278_s5 + $0x28] sm:$0xff]   ;;  %3385 = vmatprep.subr.bf16.mxu1 %v3874_v45 }
 0x181   :  { %5314 = vst [vmem:[#allocation30_spill] sm:$0xff] %v4933_v63  ;;  %5315 = vst [vmem:[#allocation31_spill] sm:$0xff] %v4936_v6  ;;  %v4938_v22 = vpop.f32.mrf.mxu1  ;;  %v4940_v38 = vadd.f32 %v1796_v26, %v1604_v27  ;;  %3386 = vmatpush3.bf16.msra.mxu1 %v3875_v36 }
 0x182   :  { %5316 = vst [vmem:[#allocation32_spill] sm:$0xff] %v4938_v22  ;;  %v1835_v21 = vpop.f32.mrf.mxu0 }
 0x183   :  { %5317 = vst [vmem:[#allocation33_spill] sm:$0xff] %v4940_v38  ;;  %v2028_v37 = vpop.f32.mrf.mxu1  ;;  %v1836_v43 = vadd.f32 %v1835_v21, %v4649_v54 }
 0x184   :  { %v1837_v2 = vpop.f32.mrf.mxu0 }
 0x185   :  { %v2030_v4 = vpop.f32.mrf.mxu1  ;;  %v1838_v23 = vadd.f32 %v1837_v2, %v4658_v60  ;;  %v2029_v10 = vadd.f32 %v2028_v37, %v1836_v43 }
 0x186   :  { %v1839_v35 = vpop.f32.mrf.mxu0 }
 0x187   :  { %v2032_v40 = vpop.f32.mrf.mxu1  ;;  %v1840_v55 = vadd.f32 %v1839_v35, %v4670_v3  ;;  %v2031_v54 = vadd.f32 %v2030_v4, %v1838_v23  ;;  %v3876_v3 = vld [vmem:[%s5278_s5 + $0x60] sm:$0xff]   ;;  %v2187_v43 = vmax.f32 %v2029_v10, 0.0 }
 0x188   :  { %v1841_v26 = vpop.f32.mrf.mxu0  ;;  %v3877_v35 = vld [vmem:[%s5278_s5 + $0x20] sm:$0xff]   ;;  %3387 = vmatprep.subr.bf16.mxu1 %v3876_v3 }
 0x189   :  { %v2034_v27 = vpop.f32.mrf.mxu1  ;;  %v2033_v21 = vadd.f32 %v2032_v40, %v1840_v55  ;;  %v1842_v38 = vadd.f32 %v1841_v26, %v4673_v7  ;;  %v3878_v7 = vld [vmem:[%s5278_s5 + $0x58] sm:$0xff]   ;;  %v2188_v55 = vmax.f32 %v2031_v54, 0.0  ;;  %3388 = vmatpush3.bf16.msra.mxu1 %v3877_v35  ;;  %v3880_v54 = vld [vmem:[%s5278_s5 + $0x50] sm:$0xff]  }
 0x18a   :  { %v1845_v60 = vpop.f32.mrf.mxu0  ;;  %3389 = vmatprep.subr.bf16.mxu1 %v3878_v7 }
 0x18b   :  { %v2038_v2 = vpop.f32.mrf.mxu1  ;;  %v2189_v37 = vmax.f32 %v2033_v21, 0.0  ;;  %v2035_v22 = vadd.f32 %v2034_v27, %v1842_v38  ;;  %v1846_v4 = vadd.f32 %v1845_v60, %v4680_v12  ;;  %v3879_v38 = vld [vmem:[%s5278_s5 + $0x18] sm:$0xff]  }
 0x18c   :  { %v1847_v40 = vpop.f32.mrf.mxu0 }
 0x18d   :  { %v2040_v23 = vpop.f32.mrf.mxu1  ;;  %v2251_v45 = vpack.c.bf16 %v2189_v37, %v2187_v43  ;;  %v2190_v36 = vmax.f32 %v2035_v22, 0.0  ;;  %v1848_v26 = vadd.f32 %v1847_v40, %v4692_v19  ;;  %v2039_v12 = vadd.f32 %v2038_v2, %v1846_v4  ;;  %3390 = vmatpush3.bf16.msra.mxu1 %v3879_v38  ;;  %v3883_v38 = vld [vmem:[%s5278_s5 + $0x8] sm:$0xff]  }
 0x18e   :  { %v1849_v63 = vpop.f32.mrf.mxu0  ;;  %3391 = vmatprep.subr.bf16.mxu1 %v3880_v54 }
 0x18f   :  { %v2042_v6 = vpop.f32.mrf.mxu1  ;;  %v1850_v10 = vadd.f32 %v1849_v63, %v4698_v24  ;;  %v2252_v27 = vpack.c.bf16 %v2190_v36, %v2188_v55  ;;  %v2041_v60 = vadd.f32 %v2040_v23, %v1848_v26  ;;  %v3881_v24 = vld [vmem:[%s5278_s5 + $0x10] sm:$0xff]   ;;  %v2191_v63 = vmax.f32 %v2039_v12, 0.0 }
 0x190   :  { %v1851_v21 = vpop.f32.mrf.mxu0 }
 0x191   :  { %v2044_v22 = vpop.f32.mrf.mxu1  ;;  %v2043_v19 = vadd.f32 %v2042_v6, %v1850_v10  ;;  %v1852_v3 = vadd.f32 %v1851_v21, %v4701_v28  ;;  %2519 = vmatprep.mubr.bf16.mxu0 %v2252_v27  ;;  %v3882_v6 = vld [vmem:[%s5278_s5 + $0x48] sm:$0xff]   ;;  %v2192_v40 = vmax.f32 %v2041_v60, 0.0  ;;  %3392 = vmatpush3.bf16.msra.mxu1 %v3881_v24  ;;  %v3884_v27 = vld [vmem:[%s5278_s5 + $0x40] sm:$0xff]  }
 0x192   :  { %v1855_v35 = vpop.f32.mrf.mxu0  ;;  %2520 = vmatmul.mubr.bf16.vlgmr.msra.gmra.mxu0 %v2251_v45  ;;  %3393 = vmatprep.subr.bf16.mxu1 %v3882_v6 }
 0x193   :  { %v2048_v43 = vpop.f32.mrf.mxu1  ;;  %v2193_v2 = vmax.f32 %v2043_v19, 0.0  ;;  %v2045_v37 = vadd.f32 %v2044_v22, %v1852_v3  ;;  %v1856_v4 = vadd.f32 %v1855_v35, %v4705_v32 }
 0x194   :  { %v1857_v28 = vpop.f32.mrf.mxu0 }
 0x195   :  { %v2050_v7 = vpop.f32.mrf.mxu1  ;;  %v2253_v23 = vpack.c.bf16 %v2193_v2, %v2191_v63  ;;  %v2194_v55 = vmax.f32 %v2045_v37, 0.0  ;;  %v1858_v45 = vadd.f32 %v1857_v28, %v4714_v41  ;;  %v2049_v32 = vadd.f32 %v2048_v43, %v1856_v4  ;;  %3394 = vmatpush3.bf16.msra.mxu1 %v3883_v38 }
 0x196   :  { %v1859_v36 = vpop.f32.mrf.mxu0  ;;  %3395 = vmatprep.subr.bf16.mxu1 %v3884_v27 }
 0x197   :  { %v2052_v26 = vpop.f32.mrf.mxu1  ;;  %v1860_v12 = vadd.f32 %v1859_v36, %v4720_v48  ;;  %v2254_v10 = vpack.c.bf16 %v2194_v55, %v2192_v40  ;;  %v2051_v22 = vadd.f32 %v2050_v7, %v1858_v45  ;;  %v3885_v48 = vld [vmem:[%s5278_s5] sm:$0xff]   ;;  %v2195_v35 = vmax.f32 %v2049_v32, 0.0 }
 0x198   :  { %v1861_v54 = vpop.f32.mrf.mxu0 }
 0x199   :  { %v2054_v21 = vpop.f32.mrf.mxu1  ;;  %v2053_v41 = vadd.f32 %v2052_v26, %v1860_v12  ;;  %v1862_v60 = vadd.f32 %v1861_v54, %v4723_v53  ;;  %2529 = vmatprep.mubr.bf16.mxu0 %v2254_v10  ;;  %v2196_v4 = vmax.f32 %v2051_v22, 0.0  ;;  %3396 = vmatpush3.bf16.msra.mxu1 %v3885_v48  ;;  %v1496_v12 = vadd.f32 %v4764_v29, %v4645_v47 }
 0x19a   :  { %v1865_v19 = vpop.f32.mrf.mxu0  ;;  %2530 = vmatmul.mubr.bf16.gmra.mxu0 %v2253_v23 }
 0x19b   :  { %v2058_v3 = vpop.f32.mrf.mxu1  ;;  %v2197_v43 = vmax.f32 %v2053_v41, 0.0  ;;  %v2055_v24 = vadd.f32 %v2054_v21, %v1862_v60  ;;  %v1866_v63 = vadd.f32 %v1865_v19, %v4727_v58 }
 0x19c   :  { %v1867_v2 = vpop.f32.mrf.mxu0 }
 0x19d   :  { %v2060_v37 = vpop.f32.mrf.mxu1  ;;  %v2255_v6 = vpack.c.bf16 %v2197_v43, %v2195_v35  ;;  %v2198_v53 = vmax.f32 %v2055_v24, 0.0  ;;  %v1868_v28 = vadd.f32 %v1867_v2, %v4736_v1  ;;  %v2059_v23 = vadd.f32 %v2058_v3, %v1866_v63 }
 0x19e   :  { %v1869_v7 = vpop.f32.mrf.mxu0  ;;  %v1689_v43 = vadd.f32 %v4766_v30, %v1496_v12 }
 0x19f   :  { %v2062_v40 = vpop.f32.mrf.mxu1  ;;  %v1870_v55 = vadd.f32 %v1869_v7, %v4742_v8  ;;  %v2256_v45 = vpack.c.bf16 %v2198_v53, %v2196_v4  ;;  %v2061_v38 = vadd.f32 %v2060_v37, %v1868_v28  ;;  %v2199_v1 = vmax.f32 %v2059_v23, 0.0 }
 0x1a0   :  { %v1871_v36 = vpop.f32.mrf.mxu0  ;;  %v1506_v53 = vadd.f32 %v4787_v57, %v4645_v47 }
 0x1a1   :  { %v2064_v26 = vpop.f32.mrf.mxu1  ;;  %v2063_v32 = vadd.f32 %v2062_v40, %v1870_v55  ;;  %v1872_v58 = vadd.f32 %v1871_v36, %v4745_v13  ;;  %2539 = vmatprep.mubr.bf16.mxu0 %v2256_v45  ;;  %v2200_v60 = vmax.f32 %v2061_v38, 0.0 }
 0x1a2   :  { %v1875_v10 = vpop.f32.mrf.mxu0  ;;  %2540 = vmatmul.mubr.bf16.gmra.mxu0 %v2255_v6  ;;  %v1699_v12 = vadd.f32 %v4789_v59, %v1506_v53 }
 0x1a3   :  { %v2068_v27 = vpop.f32.mrf.mxu1  ;;  %v2201_v54 = vmax.f32 %v2063_v32, 0.0  ;;  %v2065_v21 = vadd.f32 %v2064_v26, %v1872_v58  ;;  %v1876_v22 = vadd.f32 %v1875_v10, %v4749_v17 }
 0x1a4   :  { %v1877_v8 = vpop.f32.mrf.mxu0 }
 0x1a5   :  { %v2070_v41 = vpop.f32.mrf.mxu1  ;;  %v2257_v19 = vpack.c.bf16 %v2201_v54, %v2199_v1  ;;  %v2202_v3 = vmax.f32 %v2065_v21, 0.0  ;;  %v1878_v48 = vadd.f32 %v1877_v8, %v4758_v25  ;;  %v2069_v29 = vadd.f32 %v2068_v27, %v1876_v22 }
 0x1a6   :  { %v1879_v13 = vpop.f32.mrf.mxu0  ;;  %v1516_v8 = vadd.f32 %v4807_v16, %v4645_v47 }
 0x1a7   :  { %v2072_v35 = vpop.f32.mrf.mxu1  ;;  %v1880_v24 = vadd.f32 %v1879_v13, %v4768_v31  ;;  %v2258_v63 = vpack.c.bf16 %v2202_v3, %v2200_v60  ;;  %v2071_v4 = vadd.f32 %v2070_v41, %v1878_v48  ;;  %v2203_v25 = vmax.f32 %v2069_v29, 0.0 }
 0x1a8   :  { %v1881_v2 = vpop.f32.mrf.mxu0 }
 0x1a9   :  { %v2074_v37 = vpop.f32.mrf.mxu1  ;;  %v2073_v6 = vadd.f32 %v2072_v35, %v1880_v24  ;;  %v1882_v17 = vadd.f32 %v1881_v2, %v1689_v43  ;;  %2549 = vmatprep.mubr.bf16.mxu0 %v2258_v63  ;;  %v2204_v45 = vmax.f32 %v2071_v4, 0.0  ;;  %v1709_v2 = vadd.f32 %v4809_v18, %v1516_v8 }
 0x1aa   :  { %v1885_v28 = vpop.f32.mrf.mxu0  ;;  %2550 = vmatmul.mubr.bf16.gmra.mxu0 %v2257_v19 }
 0x1ab   :  { %v2078_v7 = vpop.f32.mrf.mxu1  ;;  %v2205_v40 = vmax.f32 %v2073_v6, 0.0  ;;  %v2075_v23 = vadd.f32 %v2074_v37, %v1882_v17  ;;  %v1886_v30 = vadd.f32 %v1885_v28, %v4772_v42 }
 0x1ac   :  { %v1887_v55 = vpop.f32.mrf.mxu0 }
 0x1ad   :  { %v2080_v31 = vpop.f32.mrf.mxu1  ;;  %v2259_v36 = vpack.c.bf16 %v2205_v40, %v2203_v25  ;;  %v2206_v26 = vmax.f32 %v2075_v23, 0.0  ;;  %v1888_v38 = vadd.f32 %v1887_v55, %v4781_v52  ;;  %v2079_v10 = vadd.f32 %v2078_v7, %v1886_v30 }
 0x1ae   :  { %v1889_v32 = vpop.f32.mrf.mxu0  ;;  %v1526_v7 = vadd.f32 %v4820_v44, %v4645_v47 }
 0x1af   :  { %v2082_v58 = vpop.f32.mrf.mxu1  ;;  %v2260_v57 = vpack.c.bf16 %v2206_v26, %v2204_v45  ;;  %v1890_v27 = vadd.f32 %v1889_v32, %v4791_v61  ;;  %v2081_v21 = vadd.f32 %v2080_v31, %v1888_v38  ;;  %v2207_v52 = vmax.f32 %v2079_v10, 0.0 }
 0x1b0   :  { %v1891_v1 = vpop.f32.mrf.mxu0 }
 0x1b1   :  { %v2084_v54 = vpop.f32.mrf.mxu1  ;;  %v2083_v22 = vadd.f32 %v2082_v58, %v1890_v27  ;;  %v1892_v42 = vadd.f32 %v1891_v1, %v1699_v12  ;;  %2559 = vmatprep.mubr.bf16.mxu0 %v2260_v57  ;;  %v2208_v61 = vmax.f32 %v2081_v21, 0.0  ;;  %v1719_v58 = vadd.f32 %v4822_v46, %v1526_v7 }
 0x1b2   :  { %v1895_v41 = vpop.f32.mrf.mxu0  ;;  %2560 = vmatmul.mubr.bf16.gmra.mxu0 %v2259_v36  ;;  %v1536_v21 = vadd.f32 %v4833_v11, %v4645_v47 }
 0x1b3   :  { %v2088_v60 = vpop.f32.mrf.mxu1  ;;  %v2209_v19 = vmax.f32 %v2083_v22, 0.0  ;;  %v2085_v3 = vadd.f32 %v2084_v54, %v1892_v42  ;;  %v1896_v59 = vadd.f32 %v1895_v41, %v4795_v5 }
 0x1b4   :  { %v1897_v48 = vpop.f32.mrf.mxu0 }
 0x1b5   :  { %v2090_v13 = vpop.f32.mrf.mxu1  ;;  %v2261_v35 = vpack.c.bf16 %v2209_v19, %v2207_v52  ;;  %v2210_v43 = vmax.f32 %v2085_v3, 0.0  ;;  %v1898_v29 = vadd.f32 %v1897_v48, %v4804_v15  ;;  %v2089_v37 = vadd.f32 %v2088_v60, %v1896_v59 }
 0x1b6   :  { %v1899_v24 = vpop.f32.mrf.mxu0 }
 0x1b7   :  { %v2092_v63 = vpop.f32.mrf.mxu1  ;;  %v2262_v16 = vpack.c.bf16 %v2210_v43, %v2208_v61  ;;  %v1900_v4 = vadd.f32 %v1899_v24, %v4811_v20  ;;  %v2091_v53 = vadd.f32 %v2090_v13, %v1898_v29  ;;  %v2211_v15 = vmax.f32 %v2089_v37, 0.0 }
 0x1b8   :  { %v1901_v6 = vpop.f32.mrf.mxu0  ;;  %v1729_v61 = vadd.f32 %v4835_v14, %v1536_v21  ;;  %v5321_v21 = vld [vmem:[#allocation5_spill] sm:$0xff] }
 0x1b9   :  { %v2094_v17 = vpop.f32.mrf.mxu1  ;;  %v2093_v28 = vadd.f32 %v2092_v63, %v1900_v4  ;;  %v1902_v5 = vadd.f32 %v1901_v6, %v1709_v2  ;;  %2569 = vmatprep.mubr.bf16.mxu0 %v2262_v16  ;;  %v2212_v20 = vmax.f32 %v2091_v53, 0.0  ;;  %v1546_v16 = vadd.f32 %v4846_v56, %v4645_v47 }
 0x1ba   :  { %v1905_v25 = vpop.f32.mrf.mxu0  ;;  %2570 = vmatmul.mubr.bf16.gmra.mxu0 %v2261_v35 }
 0x1bb   :  { %v2098_v40 = vpop.f32.mrf.mxu1  ;;  %v2213_v23 = vmax.f32 %v2093_v28, 0.0  ;;  %v2095_v30 = vadd.f32 %v2094_v17, %v1902_v5  ;;  %v1906_v18 = vadd.f32 %v1905_v25, %v4814_v33 }
 0x1bc   :  { %v1907_v55 = vpop.f32.mrf.mxu0 }
 0x1bd   :  { %v2100_v31 = vpop.f32.mrf.mxu1  ;;  %v2263_v45 = vpack.c.bf16 %v2213_v23, %v2211_v15  ;;  %v2214_v36 = vmax.f32 %v2095_v30, 0.0  ;;  %v1908_v26 = vadd.f32 %v1907_v55, %v4817_v39  ;;  %v2099_v12 = vadd.f32 %v2098_v40, %v1906_v18  ;;  %v5318_v18 = vld [vmem:[#allocation3_spill] sm:$0xff] }
 0x1be   :  { %v1909_v38 = vpop.f32.mrf.mxu0  ;;  %v1739_v23 = vadd.f32 %v4848_v62, %v1546_v16  ;;  %v5320_v62 = vld [vmem:[#allocation4_spill] sm:$0xff] }
 0x1bf   :  { %v2102_v32 = vpop.f32.mrf.mxu1  ;;  %v2264_v44 = vpack.c.bf16 %v2214_v36, %v2212_v20  ;;  %v1910_v57 = vadd.f32 %v1909_v38, %v4824_v49  ;;  %v2101_v1 = vadd.f32 %v2100_v31, %v1908_v26  ;;  %v2215_v39 = vmax.f32 %v2099_v12, 0.0  ;;  %v5319_v26 = vld [vmem:[#allocation6_spill] sm:$0xff] }
 0x1c0   :  { %v1911_v10 = vpop.f32.mrf.mxu0  ;;  %v1556_v38 = vadd.f32 %v5319_v26, %v4645_v47 }
 0x1c1   :  { %v2104_v27 = vpop.f32.mrf.mxu1  ;;  %v2103_v54 = vadd.f32 %v2102_v32, %v1910_v57  ;;  %v1912_v33 = vadd.f32 %v1911_v10, %v1719_v58  ;;  %2579 = vmatprep.mubr.bf16.mxu0 %v2264_v44  ;;  %v2216_v49 = vmax.f32 %v2101_v1, 0.0 }
 0x1c2   :  { %v1915_v22 = vpop.f32.mrf.mxu0  ;;  %2580 = vmatmul.mubr.bf16.gmra.mxu0 %v2263_v45 }
 0x1c3   :  { %v2108_v42 = vpop.f32.mrf.mxu1  ;;  %v2217_v8 = vmax.f32 %v2103_v54, 0.0  ;;  %v2105_v41 = vadd.f32 %v2104_v27, %v1912_v33  ;;  %v1916_v46 = vadd.f32 %v1915_v22, %v4827_v0 }
 0x1c4   :  { %v1917_v60 = vpop.f32.mrf.mxu0 }
 0x1c5   :  { %v2110_v52 = vpop.f32.mrf.mxu1  ;;  %v2265_v19 = vpack.c.bf16 %v2217_v8, %v2215_v39  ;;  %v2218_v3 = vmax.f32 %v2105_v41, 0.0  ;;  %v1918_v59 = vadd.f32 %v1917_v60, %v4830_v9  ;;  %v2109_v35 = vadd.f32 %v2108_v42, %v1916_v46  ;;  %v5322_v8 = vld [vmem:[#allocation7_spill] sm:$0xff] }
 0x1c6   :  { %v1919_v48 = vpop.f32.mrf.mxu0  ;;  %v1749_v41 = vadd.f32 %v5322_v8, %v1556_v38 }
 0x1c7   :  { %v2112_v13 = vpop.f32.mrf.mxu1  ;;  %v2266_v11 = vpack.c.bf16 %v2218_v3, %v2216_v49  ;;  %v1920_v43 = vadd.f32 %v1919_v48, %v4837_v50  ;;  %v2111_v63 = vadd.f32 %v2110_v52, %v1918_v59  ;;  %v2219_v9 = vmax.f32 %v2109_v35, 0.0  ;;  %v5323_v52 = vld [vmem:[#allocation8_spill] sm:$0xff] }
 0x1c8   :  { %v1921_v29 = vpop.f32.mrf.mxu0 }
 0x1c9   :  { %v2114_v24 = vpop.f32.mrf.mxu1  ;;  %v2113_v2 = vadd.f32 %v2112_v13, %v1920_v43  ;;  %v1922_v0 = vadd.f32 %v1921_v29, %v1729_v61  ;;  %2589 = vmatprep.mubr.bf16.mxu0 %v2266_v11  ;;  %v2220_v50 = vmax.f32 %v2111_v63, 0.0  ;;  %v5324_v61 = vld [vmem:[#allocation11_spill] sm:$0xff] }
 0x1ca   :  { %v1925_v37 = vpop.f32.mrf.mxu0  ;;  %2590 = vmatmul.mubr.bf16.gmra.mxu0 %v2265_v19  ;;  %v1566_v11 = vadd.f32 %v5324_v61, %v4645_v47 }
 0x1cb   :  { %v2118_v4 = vpop.f32.mrf.mxu1  ;;  %v2221_v6 = vmax.f32 %v2113_v2, 0.0  ;;  %v2115_v17 = vadd.f32 %v2114_v24, %v1922_v0  ;;  %v1926_v14 = vadd.f32 %v1925_v37, %v4840_v34  ;;  %v5325_v2 = vld [vmem:[#allocation9_spill] sm:$0xff] }
 0x1cc   :  { %v1927_v53 = vpop.f32.mrf.mxu0 }
 0x1cd   :  { %v2120_v28 = vpop.f32.mrf.mxu1  ;;  %v2267_v5 = vpack.c.bf16 %v2221_v6, %v2219_v9  ;;  %v2222_v7 = vmax.f32 %v2115_v17, 0.0  ;;  %v1928_v25 = vadd.f32 %v1927_v53, %v4843_v51  ;;  %v2119_v30 = vadd.f32 %v2118_v4, %v1926_v14  ;;  %v5326_v17 = vld [vmem:[#allocation10_spill] sm:$0xff] }
 0x1ce   :  { %v1929_v40 = vpop.f32.mrf.mxu0 }
 0x1cf   :  { %v2122_v15 = vpop.f32.mrf.mxu1  ;;  %v2268_v56 = vpack.c.bf16 %v2222_v7, %v2220_v50  ;;  %v1930_v55 = vadd.f32 %v1929_v40, %v5318_v18  ;;  %v2121_v45 = vadd.f32 %v2120_v28, %v1928_v25  ;;  %v2223_v51 = vmax.f32 %v2119_v30, 0.0  ;;  %v5327_v50 = vld [vmem:[#allocation12_spill] sm:$0xff]  ;;  %v5328_v40 = vld [vmem:[#allocation13_spill] sm:$0xff] }
 0x1d0   :  { %v1931_v31 = vpop.f32.mrf.mxu0 }
 0x1d1   :  { %v2124_v20 = vpop.f32.mrf.mxu1  ;;  %v2123_v36 = vadd.f32 %v2122_v15, %v1930_v55  ;;  %v1932_v34 = vadd.f32 %v1931_v31, %v1739_v23  ;;  %2599 = vmatprep.mubr.bf16.mxu0 %v2268_v56  ;;  %v2224_v1 = vmax.f32 %v2121_v45, 0.0  ;;  %v5329_v31 = vld [vmem:[#allocation16_spill] sm:$0xff] }
 0x1d2   :  { %v1935_v32 = vpop.f32.mrf.mxu0  ;;  %2600 = vmatmul.mubr.bf16.gmra.mxu0 %v2267_v5  ;;  %v1759_v5 = vadd.f32 %v5327_v50, %v1566_v11 }
 0x1d3   :  { %v2128_v58 = vpop.f32.mrf.mxu1  ;;  %v2225_v44 = vmax.f32 %v2123_v36, 0.0  ;;  %v2125_v12 = vadd.f32 %v2124_v20, %v1932_v34  ;;  %v1936_v57 = vadd.f32 %v1935_v32, %v5320_v62  ;;  %v1576_v20 = vadd.f32 %v5329_v31, %v4645_v47  ;;  %v5330_v32 = vld [vmem:[#allocation14_spill] sm:$0xff] }
 0x1d4   :  { %v1937_v10 = vpop.f32.mrf.mxu0 }
 0x1d5   :  { %v2130_v27 = vpop.f32.mrf.mxu1  ;;  %v2269_v54 = vpack.c.bf16 %v2225_v44, %v2223_v51  ;;  %v2226_v33 = vmax.f32 %v2125_v12, 0.0  ;;  %v1938_v22 = vadd.f32 %v1937_v10, %v5321_v21  ;;  %v2129_v60 = vadd.f32 %v2128_v58, %v1936_v57  ;;  %v5331_v10 = vld [vmem:[#allocation15_spill] sm:$0xff] }
 0x1d6   :  { %v1939_v42 = vpop.f32.mrf.mxu0 }
 0x1d7   :  { %v2132_v39 = vpop.f32.mrf.mxu1  ;;  %v2270_v46 = vpack.c.bf16 %v2226_v33, %v2224_v1  ;;  %v1940_v49 = vadd.f32 %v1939_v42, %v5323_v52  ;;  %v2131_v59 = vadd.f32 %v2130_v27, %v1938_v22  ;;  %v2227_v29 = vmax.f32 %v2129_v60, 0.0  ;;  %v5332_v33 = vld [vmem:[#allocation17_spill] sm:$0xff] }
 0x1d8   :  { %v1941_v19 = vpop.f32.mrf.mxu0  ;;  %v1769_v21 = vadd.f32 %v5332_v33, %v1576_v20 }
 0x1d9   :  { %v2134_v3 = vpop.f32.mrf.mxu1  ;;  %v2133_v48 = vadd.f32 %v2132_v39, %v1940_v49  ;;  %v1942_v13 = vadd.f32 %v1941_v19, %v1749_v41  ;;  %2609 = vmatprep.mubr.bf16.mxu0 %v2270_v46  ;;  %v2228_v4 = vmax.f32 %v2131_v59, 0.0  ;;  %v5333_v39 = vld [vmem:[#allocation18_spill] sm:$0xff]  ;;  %v5334_v19 = vld [vmem:[#allocation21_spill] sm:$0xff] }
 0x1da   :  { %v1945_v35 = vpop.f32.mrf.mxu0  ;;  %2610 = vmatmul.mubr.bf16.gmra.mxu0 %v2269_v54 }
 0x1db   :  { %v2138_v43 = vpop.f32.mrf.mxu1  ;;  %v2229_v24 = vmax.f32 %v2133_v48, 0.0  ;;  %v2135_v63 = vadd.f32 %v2134_v3, %v1942_v13  ;;  %v1946_v0 = vadd.f32 %v1945_v35, %v5325_v2  ;;  %v1586_v3 = vadd.f32 %v5334_v19, %v4645_v47  ;;  %v5335_v35 = vld [vmem:[#allocation19_spill] sm:$0xff] }
 0x1dc   :  { %v1947_v16 = vpop.f32.mrf.mxu0 }
 0x1dd   :  { %v2140_v37 = vpop.f32.mrf.mxu1  ;;  %v2271_v9 = vpack.c.bf16 %v2229_v24, %v2227_v29  ;;  %v2230_v6 = vmax.f32 %v2135_v63, 0.0  ;;  %v1948_v14 = vadd.f32 %v1947_v16, %v5326_v17  ;;  %v2139_v25 = vadd.f32 %v2138_v43, %v1946_v0  ;;  %v5336_v16 = vld [vmem:[#allocation20_spill] sm:$0xff] }
 0x1de   :  { %v1949_v53 = vpop.f32.mrf.mxu0 }
 0x1df   :  { %v2142_v28 = vpop.f32.mrf.mxu1  ;;  %v2272_v7 = vpack.c.bf16 %v2230_v6, %v2228_v4  ;;  %v1950_v15 = vadd.f32 %v1949_v53, %v5328_v40  ;;  %v2141_v30 = vadd.f32 %v2140_v37, %v1948_v14  ;;  %v2231_v34 = vmax.f32 %v2139_v25, 0.0  ;;  %v5337_v6 = vld [vmem:[#allocation22_spill] sm:$0xff] }
 0x1e0   :  { %v1951_v23 = vpop.f32.mrf.mxu0  ;;  %v1779_v17 = vadd.f32 %v5337_v6, %v1586_v3 }
 0x1e1   :  { %v2144_v56 = vpop.f32.mrf.mxu1  ;;  %v2143_v18 = vadd.f32 %v2142_v28, %v1950_v15  ;;  %v1952_v55 = vadd.f32 %v1951_v23, %v1759_v5  ;;  %2619 = vmatprep.mubr.bf16.mxu0 %v2272_v7  ;;  %v2232_v12 = vmax.f32 %v2141_v30, 0.0  ;;  %v5338_v28 = vld [vmem:[#allocation23_spill] sm:$0xff]  ;;  %v5339_v23 = vld [vmem:[#allocation26_spill] sm:$0xff] }
 0x1e2   :  { %v1955_v45 = vpop.f32.mrf.mxu0  ;;  %2620 = vmatmul.mubr.bf16.gmra.mxu0 %v2271_v9 }
 0x1e3   :  { %v2148_v36 = vpop.f32.mrf.mxu1  ;;  %v2233_v26 = vmax.f32 %v2143_v18, 0.0  ;;  %v2145_v38 = vadd.f32 %v2144_v56, %v1952_v55  ;;  %v1956_v58 = vadd.f32 %v1955_v45, %v5330_v32  ;;  %v1596_v56 = vadd.f32 %v5339_v23, %v4645_v47  ;;  %v5340_v45 = vld [vmem:[#allocation24_spill] sm:$0xff] }
 0x1e4   :  { %v1957_v51 = vpop.f32.mrf.mxu0 }
 0x1e5   :  { %v2150_v44 = vpop.f32.mrf.mxu1  ;;  %v2273_v62 = vpack.c.bf16 %v2233_v26, %v2231_v34  ;;  %v2234_v57 = vmax.f32 %v2145_v38, 0.0  ;;  %v1958_v27 = vadd.f32 %v1957_v51, %v5331_v10  ;;  %v2149_v42 = vadd.f32 %v2148_v36, %v1956_v58  ;;  %v5341_v51 = vld [vmem:[#allocation25_spill] sm:$0xff] }
 0x1e6   :  { %v1959_v1 = vpop.f32.mrf.mxu0 }
 0x1e7   :  { %v2152_v54 = vpop.f32.mrf.mxu1  ;;  %v2274_v22 = vpack.c.bf16 %v2234_v57, %v2232_v12  ;;  %v1960_v8 = vadd.f32 %v1959_v1, %v5333_v39  ;;  %v2151_v60 = vadd.f32 %v2150_v44, %v1958_v27  ;;  %v2235_v13 = vmax.f32 %v2149_v42, 0.0  ;;  %v5342_v57 = vld [vmem:[#allocation27_spill] sm:$0xff] }
 0x1e8   :  { %v1961_v41 = vpop.f32.mrf.mxu0  ;;  %v1789_v10 = vadd.f32 %v5342_v57, %v1596_v56  ;;  %v2315_v56 = vld [vmem:[%s5279_s4] sm:$0x3] }
 0x1e9   :  { %v2154_v46 = vpop.f32.mrf.mxu1  ;;  %v2153_v52 = vadd.f32 %v2152_v54, %v1960_v8  ;;  %v1962_v49 = vadd.f32 %v1961_v41, %v1769_v21  ;;  %2629 = vmatprep.mubr.bf16.mxu0 %v2274_v22  ;;  %v2236_v63 = vmax.f32 %v2151_v60, 0.0  ;;  %v5343_v54 = vld [vmem:[#allocation28_spill] sm:$0xff]  ;;  %v5344_v41 = vld [vmem:[#allocation31_spill] sm:$0xff] }
 0x1ea   :  { %v1965_v59 = vpop.f32.mrf.mxu0  ;;  %2630 = vmatmul.mubr.bf16.gmra.mxu0 %v2273_v62 }
 0x1eb   :  { %v2158_v48 = vpop.f32.mrf.mxu1  ;;  %v2237_v61 = vmax.f32 %v2153_v52, 0.0  ;;  %v2155_v11 = vadd.f32 %v2154_v46, %v1962_v49  ;;  %v1966_v43 = vadd.f32 %v1965_v59, %v5335_v35  ;;  %v1606_v46 = vadd.f32 %v5344_v41, %v4645_v47  ;;  %v5345_v59 = vld [vmem:[#allocation29_spill] sm:$0xff] }
 0x1ec   :  { %v1967_v29 = vpop.f32.mrf.mxu0 }
 0x1ed   :  { %v2160_v24 = vpop.f32.mrf.mxu1  ;;  %v2275_v2 = vpack.c.bf16 %v2237_v61, %v2235_v13  ;;  %v2238_v0 = vmax.f32 %v2155_v11, 0.0  ;;  %v1968_v37 = vadd.f32 %v1967_v29, %v5336_v16  ;;  %v2159_v53 = vadd.f32 %v2158_v48, %v1966_v43  ;;  %v5346_v29 = vld [vmem:[#allocation30_spill] sm:$0xff] }
 0x1ee   :  { %v1969_v4 = vpop.f32.mrf.mxu0 }
 0x1ef   :  { %v2162_v9 = vpop.f32.mrf.mxu1  ;;  %v2276_v14 = vpack.c.bf16 %v2238_v0, %v2236_v63  ;;  %v1970_v50 = vadd.f32 %v1969_v4, %v5338_v28  ;;  %v2161_v25 = vadd.f32 %v2160_v24, %v1968_v37  ;;  %v2239_v55 = vmax.f32 %v2159_v53, 0.0  ;;  %v5347_v0 = vld [vmem:[#allocation32_spill] sm:$0xff]  ;;  %v5348_v4 = vld [vmem:[#allocation33_spill] sm:$0xff] }
 0x1f0   :  { %v1971_v5 = vpop.f32.mrf.mxu0  ;;  %v1799_v16 = vadd.f32 %v5347_v0, %v1606_v46 }
 0x1f1   :  { %v2164_v7 = vpop.f32.mrf.mxu1  ;;  %v2163_v40 = vadd.f32 %v2162_v9, %v1970_v50  ;;  %v1972_v15 = vadd.f32 %v1971_v5, %v1779_v17  ;;  %2639 = vmatprep.mubr.bf16.mxu0 %v2276_v14  ;;  %v2240_v38 = vmax.f32 %v2161_v25, 0.0 }
 0x1f2   :  { %v1975_v30 = vpop.f32.mrf.mxu0  ;;  %2640 = vmatmul.mubr.bf16.gmra.mxu0 %v2275_v2 }
 0x1f3   :  { %v2168_v18 = vpop.f32.mrf.mxu1  ;;  %v2241_v31 = vmax.f32 %v2163_v40, 0.0  ;;  %v2165_v20 = vadd.f32 %v2164_v7, %v1972_v15  ;;  %v1976_v36 = vadd.f32 %v1975_v30, %v5340_v45 }
 0x1f4   :  { %v1977_v34 = vpop.f32.mrf.mxu0 }
 0x1f5   :  { %v2170_v26 = vpop.f32.mrf.mxu1  ;;  %v2277_v32 = vpack.c.bf16 %v2241_v31, %v2239_v55  ;;  %v2242_v58 = vmax.f32 %v2165_v20, 0.0  ;;  %v1978_v44 = vadd.f32 %v1977_v34, %v5341_v51  ;;  %v2169_v1 = vadd.f32 %v2168_v18, %v1976_v36  ;;  %v5349_v18 = vld [vmem:[#allocation2_spill] sm:$0xff] }
 0x1f6   :  { %v1979_v12 = vpop.f32.mrf.mxu0  ;;  %v5350_v55 = vsub.s32 1, %v5349_v18  ;;  %v5351_v20 = vsub.s32 0, %v5349_v18 }
 0x1f7   :  { %v2172_v62 = vpop.f32.mrf.mxu1  ;;  %v2278_v27 = vpack.c.bf16 %v2242_v58, %v2240_v38  ;;  %v1980_v33 = vadd.f32 %v1979_v12, %v5343_v54  ;;  %v2171_v42 = vadd.f32 %v2170_v26, %v1978_v44  ;;  %v2243_v49 = vmax.f32 %v2169_v1, 0.0 }
 0x1f8   :  { %v1981_v21 = vpop.f32.mrf.mxu0  ;;  %v5071_v31 = vrot.slane %v2315_v56, %v5350_v55  ;;  %v5075_v45 = vrot.slane %v2315_v56, %v5351_v20 }
 0x1f9   :  { %v2174_v22 = vpop.f32.mrf.mxu1  ;;  %v2173_v39 = vadd.f32 %v2172_v62, %v1980_v33  ;;  %v1982_v8 = vadd.f32 %v1981_v21, %v1789_v10  ;;  %2649 = vmatprep.mubr.bf16.mxu0 %v2278_v27  ;;  %v2244_v11 = vmax.f32 %v2171_v42, 0.0 }
 0x1fa   :  { %v1985_v60 = vpop.f32.mrf.mxu0  ;;  %2650 = vmatmul.mubr.bf16.gmra.mxu0 %v2277_v32 }
 0x1fb   :  { %v2178_v52 = vpop.f32.mrf.mxu1  ;;  %v2245_v19 = vmax.f32 %v2173_v39, 0.0  ;;  %v2175_v3 = vadd.f32 %v2174_v22, %v1982_v8  ;;  %v1986_v48 = vadd.f32 %v1985_v60, %v5345_v59 }
 0x1fc   :  { %v1987_v13 = vpop.f32.mrf.mxu0 }
 0x1fd   :  { %v2180_v61 = vpop.f32.mrf.mxu1  ;;  %v2279_v35 = vpack.c.bf16 %v2245_v19, %v2243_v49  ;;  %v2246_v43 = vmax.f32 %v2175_v3, 0.0  ;;  %v1988_v24 = vadd.f32 %v1987_v13, %v5346_v29  ;;  %v2179_v37 = vadd.f32 %v2178_v52, %v1986_v48 }
 0x1fe   :  { %v1989_v63 = vpop.f32.mrf.mxu0 }
 0x1ff   :  { %v2182_v2 = vpop.f32.mrf.mxu1  ;;  %v2280_v47 = vpack.c.bf16 %v2246_v43, %v2244_v11  ;;  %v1990_v9 = vadd.f32 %v1989_v63, %v5348_v4  ;;  %v2181_v17 = vadd.f32 %v2180_v61, %v1988_v24  ;;  %v2247_v50 = vmax.f32 %v2179_v37, 0.0 }
 0x200   :  { %v1991_v6 = vpop.f32.mrf.mxu0 }
 0x201   :  { %v2183_v14 = vadd.f32 %v2182_v2, %v1990_v9  ;;  %v1992_v53 = vadd.f32 %v1991_v6, %v1799_v16  ;;  %2659 = vmatprep.mubr.bf16.mxu0 %v2280_v47  ;;  %v2184_v28 = vpop.f32.mrf.mxu1  ;;  %v2248_v25 = vmax.f32 %v2181_v17, 0.0 }
 0x202   :  { %2660 = vmatmul.mubr.bf16.gmra.mxu0 %v2279_v35 }
 0x203   :  { %v2249_v5 = vmax.f32 %v2183_v14, 0.0  ;;  %v2185_v7 = vadd.f32 %v2184_v28, %v1992_v53 }
 0x205   :  { %v2281_v40 = vpack.c.bf16 %v2249_v5, %v2247_v50  ;;  %v2250_v15 = vmax.f32 %v2185_v7, 0.0 }
 0x207   :  { %v2282_v23 = vpack.c.bf16 %v2250_v15, %v2248_v25 }
 0x209   :  { %2669 = vmatprep.mubr.bf16.mxu0 %v2282_v23 }
 0x20a   :  { %2670 = vmatmul.mubr.bf16.gmra.mxu0 %v2281_v40 }
 0x252   :  { %v2521_v30 = vpop.f32.mrf.mxu0 }
 0x253   :  { %v2522_v32 = vadd.f32 %v2521_v30, %v5075_v45 }
 0x254   :  { %v2523_v36 = vpop.f32.mrf.mxu0 }
 0x255   :  { %v2524_v26 = vadd.f32 %v2523_v36, %v5071_v31  ;;  %v2680_v10 = vmax.f32 %v2522_v32, 0.0 }
 0x256   :  { %v2525_v34 = vpop.f32.mrf.mxu0 }
 0x257   :  { %v2526_v38 = vadd.f32 %v2525_v34, %v5075_v45  ;;  %v2681_v62 = vmax.f32 %v2524_v26, 0.0 }
 0x258   :  { %v2527_v58 = vpop.f32.mrf.mxu0 }
 0x259   :  { %v2528_v51 = vadd.f32 %v2527_v58, %v5071_v31  ;;  %v2682_v44 = vmax.f32 %v2526_v38, 0.0 }
 0x25a   :  { %v2531_v12 = vpop.f32.mrf.mxu0 }
 0x25b   :  { %v2683_v57 = vmax.f32 %v2528_v51, 0.0  ;;  %v2744_v54 = vpack.c.bf16 %v2682_v44, %v2680_v10  ;;  %v2532_v42 = vadd.f32 %v2531_v12, %v5075_v45 }
 0x25c   :  { %v2533_v27 = vpop.f32.mrf.mxu0 }
 0x25d   :  { %v2745_v1 = vpack.c.bf16 %v2683_v57, %v2681_v62  ;;  %v2534_v21 = vadd.f32 %v2533_v27, %v5071_v31  ;;  %v2684_v49 = vmax.f32 %v2532_v42, 0.0 }
 0x25e   :  { %v2535_v33 = vpop.f32.mrf.mxu0 }
 0x25f   :  { %v2536_v22 = vadd.f32 %v2535_v33, %v5075_v45  ;;  %2943 = vmatprep.mubr.bf16.mxu1 %v2745_v1  ;;  %v2685_v60 = vmax.f32 %v2534_v21, 0.0 }
 0x260   :  { %v2537_v39 = vpop.f32.mrf.mxu0  ;;  %2944 = vmatmul.mubr.bf16.vlgmr.msra.gmra.mxu1 %v2744_v54 }
 0x261   :  { %v2538_v8 = vadd.f32 %v2537_v39, %v5071_v31  ;;  %v2686_v41 = vmax.f32 %v2536_v22, 0.0 }
 0x262   :  { %v2541_v46 = vpop.f32.mrf.mxu0 }
 0x263   :  { %v2687_v52 = vmax.f32 %v2538_v8, 0.0  ;;  %v2746_v59 = vpack.c.bf16 %v2686_v41, %v2684_v49  ;;  %v2542_v11 = vadd.f32 %v2541_v46, %v5075_v45 }
 0x264   :  { %v2543_v19 = vpop.f32.mrf.mxu0 }
 0x265   :  { %v2747_v3 = vpack.c.bf16 %v2687_v52, %v2685_v60  ;;  %v2544_v13 = vadd.f32 %v2543_v19, %v5071_v31  ;;  %v2688_v0 = vmax.f32 %v2542_v11, 0.0 }
 0x266   :  { %v2545_v48 = vpop.f32.mrf.mxu0 }
 0x267   :  { %v2546_v61 = vadd.f32 %v2545_v48, %v5075_v45  ;;  %2951 = vmatprep.mubr.bf16.mxu1 %v2747_v3  ;;  %v2689_v63 = vmax.f32 %v2544_v13, 0.0 }
 0x268   :  { %v2547_v35 = vpop.f32.mrf.mxu0  ;;  %2952 = vmatmul.mubr.bf16.gmra.mxu1 %v2746_v59 }
 0x269   :  { %v2548_v43 = vadd.f32 %v2547_v35, %v5071_v31  ;;  %v2690_v29 = vmax.f32 %v2546_v61, 0.0 }
 0x26a   :  { %v2551_v24 = vpop.f32.mrf.mxu0 }
 0x26b   :  { %v2691_v2 = vmax.f32 %v2548_v43, 0.0  ;;  %v2748_v37 = vpack.c.bf16 %v2690_v29, %v2688_v0  ;;  %v2552_v17 = vadd.f32 %v2551_v24, %v5075_v45 }
 0x26c   :  { %v2553_v16 = vpop.f32.mrf.mxu0 }
 0x26d   :  { %v2749_v47 = vpack.c.bf16 %v2691_v2, %v2689_v63  ;;  %v2554_v9 = vadd.f32 %v2553_v16, %v5071_v31  ;;  %v2692_v25 = vmax.f32 %v2552_v17, 0.0 }
 0x26e   :  { %v2555_v4 = vpop.f32.mrf.mxu0 }
 0x26f   :  { %v2556_v6 = vadd.f32 %v2555_v4, %v5075_v45  ;;  %2959 = vmatprep.mubr.bf16.mxu1 %v2749_v47  ;;  %v2693_v5 = vmax.f32 %v2554_v9, 0.0 }
 0x270   :  { %v2557_v14 = vpop.f32.mrf.mxu0  ;;  %2960 = vmatmul.mubr.bf16.gmra.mxu1 %v2748_v37 }
 0x271   :  { %v2558_v53 = vadd.f32 %v2557_v14, %v5071_v31  ;;  %v2694_v28 = vmax.f32 %v2556_v6, 0.0 }
 0x272   :  { %v2561_v50 = vpop.f32.mrf.mxu0 }
 0x273   :  { %v2695_v7 = vmax.f32 %v2558_v53, 0.0  ;;  %v2750_v23 = vpack.c.bf16 %v2694_v28, %v2692_v25  ;;  %v2562_v55 = vadd.f32 %v2561_v50, %v5075_v45 }
 0x274   :  { %v2563_v40 = vpop.f32.mrf.mxu0 }
 0x275   :  { %v2751_v15 = vpack.c.bf16 %v2695_v7, %v2693_v5  ;;  %v2564_v30 = vadd.f32 %v2563_v40, %v5071_v31  ;;  %v2696_v58 = vmax.f32 %v2562_v55, 0.0 }
 0x276   :  { %v2565_v56 = vpop.f32.mrf.mxu0 }
 0x277   :  { %v2566_v18 = vadd.f32 %v2565_v56, %v5075_v45  ;;  %2967 = vmatprep.mubr.bf16.mxu1 %v2751_v15  ;;  %v2697_v38 = vmax.f32 %v2564_v30, 0.0 }
 0x278   :  { %v2567_v20 = vpop.f32.mrf.mxu0  ;;  %2968 = vmatmul.mubr.bf16.gmra.mxu1 %v2750_v23 }
 0x279   :  { %v2568_v36 = vadd.f32 %v2567_v20, %v5071_v31  ;;  %v2698_v34 = vmax.f32 %v2566_v18, 0.0 }
 0x27a   :  { %v2571_v26 = vpop.f32.mrf.mxu0 }
 0x27b   :  { %v2699_v32 = vmax.f32 %v2568_v36, 0.0  ;;  %v2752_v12 = vpack.c.bf16 %v2698_v34, %v2696_v58  ;;  %v2572_v27 = vadd.f32 %v2571_v26, %v5075_v45 }
 0x27c   :  { %v2573_v51 = vpop.f32.mrf.mxu0 }
 0x27d   :  { %v2753_v44 = vpack.c.bf16 %v2699_v32, %v2697_v38  ;;  %v2574_v57 = vadd.f32 %v2573_v51, %v5071_v31  ;;  %v2700_v39 = vmax.f32 %v2572_v27, 0.0 }
 0x27e   :  { %v2575_v62 = vpop.f32.mrf.mxu0 }
 0x27f   :  { %v2576_v10 = vadd.f32 %v2575_v62, %v5075_v45  ;;  %2975 = vmatprep.mubr.bf16.mxu1 %v2753_v44  ;;  %v2701_v22 = vmax.f32 %v2574_v57, 0.0 }
 0x280   :  { %v2577_v1 = vpop.f32.mrf.mxu0  ;;  %2976 = vmatmul.mubr.bf16.gmra.mxu1 %v2752_v12 }
 0x281   :  { %v2578_v54 = vadd.f32 %v2577_v1, %v5071_v31  ;;  %v2702_v33 = vmax.f32 %v2576_v10, 0.0 }
 0x282   :  { %v2581_v21 = vpop.f32.mrf.mxu0 }
 0x283   :  { %v2703_v42 = vmax.f32 %v2578_v54, 0.0  ;;  %v2754_v46 = vpack.c.bf16 %v2702_v33, %v2700_v39  ;;  %v2582_v19 = vadd.f32 %v2581_v21, %v5075_v45 }
 0x284   :  { %v2583_v8 = vpop.f32.mrf.mxu0 }
 0x285   :  { %v2755_v41 = vpack.c.bf16 %v2703_v42, %v2701_v22  ;;  %v2584_v52 = vadd.f32 %v2583_v8, %v5071_v31  ;;  %v2704_v35 = vmax.f32 %v2582_v19, 0.0 }
 0x286   :  { %v2585_v60 = vpop.f32.mrf.mxu0 }
 0x287   :  { %v2586_v49 = vadd.f32 %v2585_v60, %v5075_v45  ;;  %2983 = vmatprep.mubr.bf16.mxu1 %v2755_v41  ;;  %v2705_v61 = vmax.f32 %v2584_v52, 0.0 }
 0x288   :  { %v2587_v3 = vpop.f32.mrf.mxu0  ;;  %2984 = vmatmul.mubr.bf16.gmra.mxu1 %v2754_v46 }
 0x289   :  { %v2588_v59 = vadd.f32 %v2587_v3, %v5071_v31  ;;  %v2706_v48 = vmax.f32 %v2586_v49, 0.0 }
 0x28a   :  { %v2591_v13 = vpop.f32.mrf.mxu0 }
 0x28b   :  { %v2707_v11 = vmax.f32 %v2588_v59, 0.0  ;;  %v2756_v24 = vpack.c.bf16 %v2706_v48, %v2704_v35  ;;  %v2592_v16 = vadd.f32 %v2591_v13, %v5075_v45 }
 0x28c   :  { %v2593_v43 = vpop.f32.mrf.mxu0 }
 0x28d   :  { %v2757_v29 = vpack.c.bf16 %v2707_v11, %v2705_v61  ;;  %v2594_v2 = vadd.f32 %v2593_v43, %v5071_v31  ;;  %v2708_v14 = vmax.f32 %v2592_v16, 0.0 }
 0x28e   :  { %v2595_v63 = vpop.f32.mrf.mxu0 }
 0x28f   :  { %v2596_v0 = vadd.f32 %v2595_v63, %v5075_v45  ;;  %2991 = vmatprep.mubr.bf16.mxu1 %v2757_v29  ;;  %v2709_v6 = vmax.f32 %v2594_v2, 0.0 }
 0x290   :  { %v2597_v47 = vpop.f32.mrf.mxu0  ;;  %2992 = vmatmul.mubr.bf16.gmra.mxu1 %v2756_v24 }
 0x291   :  { %v2598_v37 = vadd.f32 %v2597_v47, %v5071_v31  ;;  %v2710_v4 = vmax.f32 %v2596_v0, 0.0 }
 0x292   :  { %v2601_v9 = vpop.f32.mrf.mxu0 }
 0x293   :  { %v2711_v17 = vmax.f32 %v2598_v37, 0.0  ;;  %v2758_v50 = vpack.c.bf16 %v2710_v4, %v2708_v14  ;;  %v2602_v40 = vadd.f32 %v2601_v9, %v5075_v45 }
 0x294   :  { %v2603_v53 = vpop.f32.mrf.mxu0 }
 0x295   :  { %v2759_v28 = vpack.c.bf16 %v2711_v17, %v2709_v6  ;;  %v2604_v7 = vadd.f32 %v2603_v53, %v5071_v31  ;;  %v2712_v20 = vmax.f32 %v2602_v40, 0.0 }
 0x296   :  { %v2605_v5 = vpop.f32.mrf.mxu0 }
 0x297   :  { %v2606_v25 = vadd.f32 %v2605_v5, %v5075_v45  ;;  %2999 = vmatprep.mubr.bf16.mxu1 %v2759_v28  ;;  %v2713_v18 = vmax.f32 %v2604_v7, 0.0 }
 0x298   :  { %v2607_v15 = vpop.f32.mrf.mxu0  ;;  %3000 = vmatmul.mubr.bf16.gmra.mxu1 %v2758_v50 }
 0x299   :  { %v2608_v23 = vadd.f32 %v2607_v15, %v5071_v31  ;;  %v2714_v56 = vmax.f32 %v2606_v25, 0.0 }
 0x29a   :  { %v2611_v30 = vpop.f32.mrf.mxu0 }
 0x29b   :  { %v2715_v55 = vmax.f32 %v2608_v23, 0.0  ;;  %v2760_v26 = vpack.c.bf16 %v2714_v56, %v2712_v20  ;;  %v2612_v51 = vadd.f32 %v2611_v30, %v5075_v45 }
 0x29c   :  { %v2613_v36 = vpop.f32.mrf.mxu0 }
 0x29d   :  { %v2761_v34 = vpack.c.bf16 %v2715_v55, %v2713_v18  ;;  %v2614_v32 = vadd.f32 %v2613_v36, %v5071_v31  ;;  %v2716_v1 = vmax.f32 %v2612_v51, 0.0 }
 0x29e   :  { %v2615_v38 = vpop.f32.mrf.mxu0 }
 0x29f   :  { %v2616_v58 = vadd.f32 %v2615_v38, %v5075_v45  ;;  %3007 = vmatprep.mubr.bf16.mxu1 %v2761_v34  ;;  %v2717_v10 = vmax.f32 %v2614_v32, 0.0 }
 0x2a0   :  { %v2617_v44 = vpop.f32.mrf.mxu0  ;;  %3008 = vmatmul.mubr.bf16.gmra.mxu1 %v2760_v26 }
 0x2a1   :  { %v2618_v12 = vadd.f32 %v2617_v44, %v5071_v31  ;;  %v2718_v62 = vmax.f32 %v2616_v58, 0.0 }
 0x2a2   :  { %v2621_v57 = vpop.f32.mrf.mxu0 }
 0x2a3   :  { %v2719_v27 = vmax.f32 %v2618_v12, 0.0  ;;  %v2762_v21 = vpack.c.bf16 %v2718_v62, %v2716_v1  ;;  %v2622_v8 = vadd.f32 %v2621_v57, %v5075_v45 }
 0x2a4   :  { %v2623_v54 = vpop.f32.mrf.mxu0 }
 0x2a5   :  { %v2763_v33 = vpack.c.bf16 %v2719_v27, %v2717_v10  ;;  %v2624_v42 = vadd.f32 %v2623_v54, %v5071_v31  ;;  %v2720_v3 = vmax.f32 %v2622_v8, 0.0 }
 0x2a6   :  { %v2625_v22 = vpop.f32.mrf.mxu0 }
 0x2a7   :  { %v2626_v39 = vadd.f32 %v2625_v22, %v5075_v45  ;;  %3015 = vmatprep.mubr.bf16.mxu1 %v2763_v33  ;;  %v2721_v49 = vmax.f32 %v2624_v42, 0.0 }
 0x2a8   :  { %v2627_v41 = vpop.f32.mrf.mxu0  ;;  %3016 = vmatmul.mubr.bf16.gmra.mxu1 %v2762_v21 }
 0x2a9   :  { %v2628_v46 = vadd.f32 %v2627_v41, %v5071_v31  ;;  %v2722_v60 = vmax.f32 %v2626_v39, 0.0 }
 0x2aa   :  { %v2631_v52 = vpop.f32.mrf.mxu0 }
 0x2ab   :  { %v2723_v19 = vmax.f32 %v2628_v46, 0.0  ;;  %v2764_v13 = vpack.c.bf16 %v2722_v60, %v2720_v3  ;;  %v2632_v43 = vadd.f32 %v2631_v52, %v5075_v45 }
 0x2ac   :  { %v2633_v59 = vpop.f32.mrf.mxu0 }
 0x2ad   :  { %v2765_v48 = vpack.c.bf16 %v2723_v19, %v2721_v49  ;;  %v2634_v11 = vadd.f32 %v2633_v59, %v5071_v31  ;;  %v2724_v47 = vmax.f32 %v2632_v43, 0.0 }
 0x2ae   :  { %v2635_v61 = vpop.f32.mrf.mxu0 }
 0x2af   :  { %v2636_v35 = vadd.f32 %v2635_v61, %v5075_v45  ;;  %3023 = vmatprep.mubr.bf16.mxu1 %v2765_v48  ;;  %v2725_v0 = vmax.f32 %v2634_v11, 0.0 }
 0x2b0   :  { %v2637_v29 = vpop.f32.mrf.mxu0  ;;  %3024 = vmatmul.mubr.bf16.gmra.mxu1 %v2764_v13 }
 0x2b1   :  { %v2638_v24 = vadd.f32 %v2637_v29, %v5071_v31  ;;  %v2726_v63 = vmax.f32 %v2636_v35, 0.0 }
 0x2b2   :  { %v2641_v2 = vpop.f32.mrf.mxu0 }
 0x2b3   :  { %v2727_v16 = vmax.f32 %v2638_v24, 0.0  ;;  %v2766_v9 = vpack.c.bf16 %v2726_v63, %v2724_v47  ;;  %v2642_v53 = vadd.f32 %v2641_v2, %v5075_v45  ;;  %v5144_v2 = vld [vmem:[%s5280_s6] ss:$0 sm:$0xff] }
 0x2b4   :  { %v2643_v37 = vpop.f32.mrf.mxu0 }
 0x2b5   :  { %v2767_v4 = vpack.c.bf16 %v2727_v16, %v2725_v0  ;;  %v2644_v17 = vadd.f32 %v2643_v37, %v5071_v31  ;;  %v2728_v15 = vmax.f32 %v2642_v53, 0.0 }
 0x2b6   :  { %v2645_v6 = vpop.f32.mrf.mxu0 }
 0x2b7   :  { %v2646_v14 = vadd.f32 %v2645_v6, %v5075_v45  ;;  %3031 = vmatprep.mubr.bf16.mxu1 %v2767_v4  ;;  %v2729_v25 = vmax.f32 %v2644_v17, 0.0 }
 0x2b8   :  { %v2647_v28 = vpop.f32.mrf.mxu0  ;;  %3032 = vmatmul.mubr.bf16.gmra.mxu1 %v2766_v9 }
 0x2b9   :  { %v2648_v50 = vadd.f32 %v2647_v28, %v5071_v31  ;;  %v2730_v5 = vmax.f32 %v2646_v14, 0.0 }
 0x2ba   :  { %v2651_v7 = vpop.f32.mrf.mxu0 }
 0x2bb   :  { %v2731_v40 = vmax.f32 %v2648_v50, 0.0  ;;  %v2768_v30 = vpack.c.bf16 %v2730_v5, %v2728_v15  ;;  %v2652_v36 = vadd.f32 %v2651_v7, %v5075_v45 }
 0x2bc   :  { %v2653_v23 = vpop.f32.mrf.mxu0 }
 0x2bd   :  { %v2769_v56 = vpack.c.bf16 %v2731_v40, %v2729_v25  ;;  %v2654_v55 = vadd.f32 %v2653_v23, %v5071_v31  ;;  %v2732_v44 = vmax.f32 %v2652_v36, 0.0 }
 0x2be   :  { %v2655_v18 = vpop.f32.mrf.mxu0 }
 0x2bf   :  { %v2656_v20 = vadd.f32 %v2655_v18, %v5075_v45  ;;  %3039 = vmatprep.mubr.bf16.mxu1 %v2769_v56  ;;  %v2733_v58 = vmax.f32 %v2654_v55, 0.0 }
 0x2c0   :  { %v2657_v34 = vpop.f32.mrf.mxu0  ;;  %3040 = vmatmul.mubr.bf16.gmra.mxu1 %v2768_v30 }
 0x2c1   :  { %v2658_v26 = vadd.f32 %v2657_v34, %v5071_v31  ;;  %v2734_v38 = vmax.f32 %v2656_v20, 0.0 }
 0x2c2   :  { %v2661_v32 = vpop.f32.mrf.mxu0 }
 0x2c3   :  { %v2735_v51 = vmax.f32 %v2658_v26, 0.0  ;;  %v2770_v57 = vpack.c.bf16 %v2734_v38, %v2732_v44  ;;  %v2662_v54 = vadd.f32 %v2661_v32, %v5075_v45 }
 0x2c4   :  { %v2663_v12 = vpop.f32.mrf.mxu0 }
 0x2c5   :  { %v2771_v62 = vpack.c.bf16 %v2735_v51, %v2733_v58  ;;  %v2664_v27 = vadd.f32 %v2663_v12, %v5071_v31  ;;  %v2736_v41 = vmax.f32 %v2662_v54, 0.0 }
 0x2c6   :  { %v2665_v10 = vpop.f32.mrf.mxu0 }
 0x2c7   :  { %v2666_v1 = vadd.f32 %v2665_v10, %v5075_v45  ;;  %3047 = vmatprep.mubr.bf16.mxu1 %v2771_v62  ;;  %v2737_v39 = vmax.f32 %v2664_v27, 0.0 }
 0x2c8   :  { %v2667_v33 = vpop.f32.mrf.mxu0  ;;  %3048 = vmatmul.mubr.bf16.gmra.mxu1 %v2770_v57 }
 0x2c9   :  { %v2668_v21 = vadd.f32 %v2667_v33, %v5071_v31  ;;  %v2738_v22 = vmax.f32 %v2666_v1, 0.0 }
 0x2ca   :  { %v2671_v42 = vpop.f32.mrf.mxu0 }
 0x2cb   :  { %v2739_v8 = vmax.f32 %v2668_v21, 0.0  ;;  %v2772_v52 = vpack.c.bf16 %v2738_v22, %v2736_v41  ;;  %v2672_v59 = vadd.f32 %v2671_v42, %v5075_v45 }
 0x2cc   :  { %v2673_v46 = vpop.f32.mrf.mxu0 }
 0x2cd   :  { %v2773_v60 = vpack.c.bf16 %v2739_v8, %v2737_v39  ;;  %v2674_v19 = vadd.f32 %v2673_v46, %v5071_v31  ;;  %v2740_v43 = vmax.f32 %v2672_v59, 0.0 }
 0x2ce   :  { %v2675_v49 = vpop.f32.mrf.mxu0 }
 0x2cf   :  { %v2676_v3 = vadd.f32 %v2675_v49, %v5075_v45  ;;  %3055 = vmatprep.mubr.bf16.mxu1 %v2773_v60  ;;  %v2741_v11 = vmax.f32 %v2674_v19, 0.0 }
 0x2d0   :  { %v2677_v48 = vpop.f32.mrf.mxu0  ;;  %3056 = vmatmul.mubr.bf16.gmra.mxu1 %v2772_v52 }
 0x2d1   :  { %v2678_v13 = vadd.f32 %v2677_v48, %v5071_v31  ;;  %v2742_v61 = vmax.f32 %v2676_v3, 0.0 }
 0x2d3   :  { %v2743_v35 = vmax.f32 %v2678_v13, 0.0  ;;  %v2774_v24 = vpack.c.bf16 %v2742_v61, %v2740_v43 }
 0x2d5   :  { %v2775_v29 = vpack.c.bf16 %v2743_v35, %v2741_v11 }
 0x2d7   :  { %3063 = vmatprep.mubr.bf16.mxu1 %v2775_v29 }
 0x2d8   :  { %3064 = vmatmul.mubr.bf16.gmra.mxu1 %v2774_v24 }
 0x320   :  { %v3397_v63 = vpop.f32.mrf.mxu1 }
 0x322   :  { %v3398_v0 = vpop.f32.mrf.mxu1 }
 0x323   :  { %v3399_v45 = vadd.f32 %v3398_v0, %v3397_v63 }
 0x324   :  { %v3400_v16 = vpop.f32.mrf.mxu1 }
 0x325   :  { %v2946_v47 = vadd.f32 %v3399_v45, %v5144_v2 }
 0x326   :  { %v3401_v31 = vpop.f32.mrf.mxu1 }
 0x327   :  { %3072 = vst [vmem:[%s5281_s7] sm:$0xff] %v2946_v47  ;;  %v3402_v37 = vadd.f32 %v3401_v31, %v3400_v16 }
 0x328   :  { %v3403_v4 = vpop.f32.mrf.mxu1 }
 0x329   :  { %v2949_v9 = vadd.f32 %v3402_v37, %v5144_v2 }
 0x32a   :  { %v3404_v6 = vpop.f32.mrf.mxu1 }
 0x32b   :  { %3073 = vst [vmem:[%s5281_s7 + $0x8] sm:$0xff] %v2949_v9  ;;  %v3405_v17 = vadd.f32 %v3404_v6, %v3403_v4 }
 0x32c   :  { %v3406_v14 = vpop.f32.mrf.mxu1 }
 0x32d   :  { %v2954_v53 = vadd.f32 %v3405_v17, %v5144_v2 }
 0x32e   :  { %v3407_v28 = vpop.f32.mrf.mxu1 }
 0x32f   :  { %3074 = vst [vmem:[%s5281_s7 + $0x10] sm:$0xff] %v2954_v53  ;;  %v3408_v50 = vadd.f32 %v3407_v28, %v3406_v14 }
 0x330   :  { %v3409_v5 = vpop.f32.mrf.mxu1 }
 0x331   :  { %v2957_v7 = vadd.f32 %v3408_v50, %v5144_v2 }
 0x332   :  { %v3410_v25 = vpop.f32.mrf.mxu1 }
 0x333   :  { %3075 = vst [vmem:[%s5281_s7 + $0x18] sm:$0xff] %v2957_v7  ;;  %v3411_v40 = vadd.f32 %v3410_v25, %v3409_v5 }
 0x334   :  { %v3412_v15 = vpop.f32.mrf.mxu1 }
 0x335   :  { %v2962_v23 = vadd.f32 %v3411_v40, %v5144_v2 }
 0x336   :  { %v3413_v56 = vpop.f32.mrf.mxu1 }
 0x337   :  { %3076 = vst [vmem:[%s5281_s7 + $0x20] sm:$0xff] %v2962_v23  ;;  %v3414_v30 = vadd.f32 %v3413_v56, %v3412_v15 }
 0x338   :  { %v3415_v18 = vpop.f32.mrf.mxu1 }
 0x339   :  { %v2965_v55 = vadd.f32 %v3414_v30, %v5144_v2 }
 0x33a   :  { %v3416_v20 = vpop.f32.mrf.mxu1 }
 0x33b   :  { %3077 = vst [vmem:[%s5281_s7 + $0x28] sm:$0xff] %v2965_v55  ;;  %v3417_v36 = vadd.f32 %v3416_v20, %v3415_v18 }
 0x33c   :  { %v3418_v34 = vpop.f32.mrf.mxu1 }
 0x33d   :  { %v2970_v26 = vadd.f32 %v3417_v36, %v5144_v2 }
 0x33e   :  { %v3419_v38 = vpop.f32.mrf.mxu1 }
 0x33f   :  { %3078 = vst [vmem:[%s5281_s7 + $0x30] sm:$0xff] %v2970_v26  ;;  %v3420_v32 = vadd.f32 %v3419_v38, %v3418_v34 }
 0x340   :  { %v3421_v58 = vpop.f32.mrf.mxu1 }
 0x341   :  { %v2973_v51 = vadd.f32 %v3420_v32, %v5144_v2 }
 0x342   :  { %v3422_v44 = vpop.f32.mrf.mxu1 }
 0x343   :  { %3079 = vst [vmem:[%s5281_s7 + $0x38] sm:$0xff] %v2973_v51  ;;  %v3423_v12 = vadd.f32 %v3422_v44, %v3421_v58 }
 0x344   :  { %v3424_v62 = vpop.f32.mrf.mxu1 }
 0x345   :  { %v2978_v57 = vadd.f32 %v3423_v12, %v5144_v2 }
 0x346   :  { %v3425_v10 = vpop.f32.mrf.mxu1 }
 0x347   :  { %3080 = vst [vmem:[%s5281_s7 + $0x40] sm:$0xff] %v2978_v57  ;;  %v3426_v27 = vadd.f32 %v3425_v10, %v3424_v62 }
 0x348   :  { %v3427_v1 = vpop.f32.mrf.mxu1 }
 0x349   :  { %v2981_v54 = vadd.f32 %v3426_v27, %v5144_v2 }
 0x34a   :  { %v3428_v33 = vpop.f32.mrf.mxu1 }
 0x34b   :  { %3081 = vst [vmem:[%s5281_s7 + $0x48] sm:$0xff] %v2981_v54  ;;  %v3429_v21 = vadd.f32 %v3428_v33, %v3427_v1 }
 0x34c   :  { %v3430_v22 = vpop.f32.mrf.mxu1 }
 0x34d   :  { %v2986_v42 = vadd.f32 %v3429_v21, %v5144_v2 }
 0x34e   :  { %v3431_v39 = vpop.f32.mrf.mxu1 }
 0x34f   :  { %3082 = vst [vmem:[%s5281_s7 + $0x50] sm:$0xff] %v2986_v42  ;;  %v3432_v8 = vadd.f32 %v3431_v39, %v3430_v22 }
 0x350   :  { %v3433_v41 = vpop.f32.mrf.mxu1 }
 0x351   :  { %v2989_v46 = vadd.f32 %v3432_v8, %v5144_v2 }
 0x352   :  { %v3434_v60 = vpop.f32.mrf.mxu1 }
 0x353   :  { %3083 = vst [vmem:[%s5281_s7 + $0x58] sm:$0xff] %v2989_v46  ;;  %v3435_v52 = vadd.f32 %v3434_v60, %v3433_v41 }
 0x354   :  { %v3436_v49 = vpop.f32.mrf.mxu1 }
 0x355   :  { %v2994_v19 = vadd.f32 %v3435_v52, %v5144_v2 }
 0x356   :  { %v3437_v3 = vpop.f32.mrf.mxu1 }
 0x357   :  { %3084 = vst [vmem:[%s5281_s7 + $0x60] sm:$0xff] %v2994_v19  ;;  %v3438_v59 = vadd.f32 %v3437_v3, %v3436_v49 }
 0x358   :  { %v3439_v48 = vpop.f32.mrf.mxu1 }
 0x359   :  { %v2997_v13 = vadd.f32 %v3438_v59, %v5144_v2 }
 0x35a   :  { %v3440_v61 = vpop.f32.mrf.mxu1 }
 0x35b   :  { %3085 = vst [vmem:[%s5281_s7 + $0x68] sm:$0xff] %v2997_v13  ;;  %v3441_v11 = vadd.f32 %v3440_v61, %v3439_v48 }
 0x35c   :  { %v3442_v35 = vpop.f32.mrf.mxu1 }
 0x35d   :  { %v3002_v43 = vadd.f32 %v3441_v11, %v5144_v2 }
 0x35e   :  { %v3443_v29 = vpop.f32.mrf.mxu1 }
 0x35f   :  { %3086 = vst [vmem:[%s5281_s7 + $0x70] sm:$0xff] %v3002_v43  ;;  %v3444_v24 = vadd.f32 %v3443_v29, %v3442_v35 }
 0x360   :  { %v3445_v63 = vpop.f32.mrf.mxu1 }
 0x361   :  { %v3005_v0 = vadd.f32 %v3444_v24, %v5144_v2 }
 0x362   :  { %v3446_v45 = vpop.f32.mrf.mxu1 }
 0x363   :  { %3087 = vst [vmem:[%s5281_s7 + $0x78] sm:$0xff] %v3005_v0  ;;  %v3447_v16 = vadd.f32 %v3446_v45, %v3445_v63 }
 0x364   :  { %v3448_v47 = vpop.f32.mrf.mxu1 }
 0x365   :  { %v3010_v31 = vadd.f32 %v3447_v16, %v5144_v2 }
 0x366   :  { %v3449_v37 = vpop.f32.mrf.mxu1 }
 0x367   :  { %3088 = vst [vmem:[%s5281_s7 + $0x80] sm:$0xff] %v3010_v31  ;;  %v3450_v4 = vadd.f32 %v3449_v37, %v3448_v47 }
 0x368   :  { %v3451_v9 = vpop.f32.mrf.mxu1 }
 0x369   :  { %v3013_v6 = vadd.f32 %v3450_v4, %v5144_v2 }
 0x36a   :  { %v3452_v17 = vpop.f32.mrf.mxu1 }
 0x36b   :  { %3089 = vst [vmem:[%s5281_s7 + $0x88] sm:$0xff] %v3013_v6  ;;  %v3453_v14 = vadd.f32 %v3452_v17, %v3451_v9 }
 0x36c   :  { %v3454_v53 = vpop.f32.mrf.mxu1 }
 0x36d   :  { %v3018_v28 = vadd.f32 %v3453_v14, %v5144_v2 }
 0x36e   :  { %v3455_v50 = vpop.f32.mrf.mxu1 }
 0x36f   :  { %3090 = vst [vmem:[%s5281_s7 + $0x90] sm:$0xff] %v3018_v28  ;;  %v3456_v5 = vadd.f32 %v3455_v50, %v3454_v53 }
 0x370   :  { %v3457_v7 = vpop.f32.mrf.mxu1 }
 0x371   :  { %v3021_v25 = vadd.f32 %v3456_v5, %v5144_v2 }
 0x372   :  { %v3458_v40 = vpop.f32.mrf.mxu1 }
 0x373   :  { %3091 = vst [vmem:[%s5281_s7 + $0x98] sm:$0xff] %v3021_v25  ;;  %v3459_v15 = vadd.f32 %v3458_v40, %v3457_v7 }
 0x374   :  { %v3460_v23 = vpop.f32.mrf.mxu1 }
 0x375   :  { %v3026_v56 = vadd.f32 %v3459_v15, %v5144_v2 }
 0x376   :  { %v3461_v30 = vpop.f32.mrf.mxu1 }
 0x377   :  { %3092 = vst [vmem:[%s5281_s7 + $0xa0] sm:$0xff] %v3026_v56  ;;  %v3462_v18 = vadd.f32 %v3461_v30, %v3460_v23 }
 0x378   :  { %v3463_v55 = vpop.f32.mrf.mxu1 }
 0x379   :  { %v3029_v20 = vadd.f32 %v3462_v18, %v5144_v2 }
 0x37a   :  { %v3464_v36 = vpop.f32.mrf.mxu1 }
 0x37b   :  { %3093 = vst [vmem:[%s5281_s7 + $0xa8] sm:$0xff] %v3029_v20  ;;  %v3465_v34 = vadd.f32 %v3464_v36, %v3463_v55 }
 0x37c   :  { %v3466_v26 = vpop.f32.mrf.mxu1 }
 0x37d   :  { %v3034_v38 = vadd.f32 %v3465_v34, %v5144_v2 }
 0x37e   :  { %v3467_v32 = vpop.f32.mrf.mxu1 }
 0x37f   :  { %3094 = vst [vmem:[%s5281_s7 + $0xb0] sm:$0xff] %v3034_v38  ;;  %v3468_v58 = vadd.f32 %v3467_v32, %v3466_v26 }
 0x380   :  { %v3469_v51 = vpop.f32.mrf.mxu1 }
 0x381   :  { %v3037_v44 = vadd.f32 %v3468_v58, %v5144_v2 }
 0x382   :  { %v3470_v12 = vpop.f32.mrf.mxu1 }
 0x383   :  { %3095 = vst [vmem:[%s5281_s7 + $0xb8] sm:$0xff] %v3037_v44  ;;  %v3471_v62 = vadd.f32 %v3470_v12, %v3469_v51 }
 0x384   :  { %v3472_v57 = vpop.f32.mrf.mxu1 }
 0x385   :  { %v3042_v10 = vadd.f32 %v3471_v62, %v5144_v2 }
 0x386   :  { %v3473_v27 = vpop.f32.mrf.mxu1 }
 0x387   :  { %3096 = vst [vmem:[%s5281_s7 + $0xc0] sm:$0xff] %v3042_v10  ;;  %v3474_v1 = vadd.f32 %v3473_v27, %v3472_v57 }
 0x388   :  { %v3475_v54 = vpop.f32.mrf.mxu1 }
 0x389   :  { %v3045_v33 = vadd.f32 %v3474_v1, %v5144_v2 }
 0x38a   :  { %v3476_v21 = vpop.f32.mrf.mxu1 }
 0x38b   :  { %3097 = vst [vmem:[%s5281_s7 + $0xc8] sm:$0xff] %v3045_v33  ;;  %v3477_v22 = vadd.f32 %v3476_v21, %v3475_v54 }
 0x38c   :  { %v3478_v42 = vpop.f32.mrf.mxu1 }
 0x38d   :  { %v3050_v39 = vadd.f32 %v3477_v22, %v5144_v2 }
 0x38e   :  { %v3479_v8 = vpop.f32.mrf.mxu1 }
 0x38f   :  { %3098 = vst [vmem:[%s5281_s7 + $0xd0] sm:$0xff] %v3050_v39  ;;  %v3480_v41 = vadd.f32 %v3479_v8, %v3478_v42 }
 0x390   :  { %v3481_v46 = vpop.f32.mrf.mxu1 }
 0x391   :  { %v3053_v60 = vadd.f32 %v3480_v41, %v5144_v2 }
 0x392   :  { %v3482_v52 = vpop.f32.mrf.mxu1 }
 0x393   :  { %3099 = vst [vmem:[%s5281_s7 + $0xd8] sm:$0xff] %v3053_v60  ;;  %v3483_v49 = vadd.f32 %v3482_v52, %v3481_v46 }
 0x394   :  { %v3484_v19 = vpop.f32.mrf.mxu1 }
 0x395   :  { %v3058_v3 = vadd.f32 %v3483_v49, %v5144_v2 }
 0x396   :  { %v3485_v59 = vpop.f32.mrf.mxu1 }
 0x397   :  { %3100 = vst [vmem:[%s5281_s7 + $0xe0] sm:$0xff] %v3058_v3  ;;  %v3486_v48 = vadd.f32 %v3485_v59, %v3484_v19 }
 0x398   :  { %v3487_v13 = vpop.f32.mrf.mxu1 }
 0x399   :  { %v3061_v61 = vadd.f32 %v3486_v48, %v5144_v2 }
 0x39a   :  { %v3488_v11 = vpop.f32.mrf.mxu1 }
 0x39b   :  { %3101 = vst [vmem:[%s5281_s7 + $0xe8] sm:$0xff] %v3061_v61  ;;  %v3489_v35 = vadd.f32 %v3488_v11, %v3487_v13 }
 0x39c   :  { %v3490_v43 = vpop.f32.mrf.mxu1 }
 0x39d   :  { %v3066_v29 = vadd.f32 %v3489_v35, %v5144_v2 }
 0x39e   :  { %v3491_v24 = vpop.f32.mrf.mxu1 }
 0x39f   :  { %3102 = vst [vmem:[%s5281_s7 + $0xf0] sm:$0xff] %v3066_v29  ;;  %v3492_v63 = vadd.f32 %v3491_v24, %v3490_v43 }
 0x3a1   :  { %v3069_v0 = vadd.f32 %v3492_v63, %v5144_v2 }
 0x3a3   :  { %3103 = vst [vmem:[%s5281_s7 + $0xf8] sm:$0xff] %v3069_v0 }

</bundles_post_ra>
